<compile_context>
chip_gen: v7x
topology: tpu7x:2x2x1
jax: 0.10.0
libtpu: 0.0.40
codegen_flags: <defaults>
</compile_context>

<pallas_src>
import jax
import jax.numpy as jnp
import numpy as np
from jax import lax
from jax.experimental import pallas as pl
from jax.experimental.pallas import tpu as pltpu


# ----------------------------------------------------------------------------
# Host-side constant matrices (pure functions of H, W)
# ----------------------------------------------------------------------------
def _bilinear_matrix_1d(n_in, n_out):
  """(n_out, n_in) bilinear interpolation matrix, align_corners=True."""
  m = np.zeros((n_out, n_in), np.float64)
  if n_in == 1:
    m[:, 0] = 1.0
    return m.astype(np.float32)
  src = np.arange(n_out, dtype=np.float64) * (n_in - 1) / (n_out - 1)
  i0 = np.clip(np.floor(src).astype(np.int64), 0, n_in - 1)
  i1 = np.minimum(i0 + 1, n_in - 1)
  frac = src - i0
  for o in range(n_out):
    m[o, i0[o]] += 1.0 - frac[o]
    m[o, i1[o]] += frac[o]
  return m.astype(np.float32)


def _make_structure_matrices(H, W):
  """Bilinear-resample matrix and the combined flat-spatial shift matrix."""
  ah = _bilinear_matrix_1d(H, 2 * H)                   # (2H, H)
  aw = _bilinear_matrix_1d(W, 2 * W)                   # (2W, W)

  # Bilinear x2 upsample, one (HW, HW) block per output parity class (r, c),
  # packed as columns of a single right-multiplication matrix (HW, 4*HW).
  blocks = []
  for r in range(2):
    for c in range(2):
      m = np.kron(ah[r::2, :], aw[c::2, :])            # [iy*W+ix, h*W+w]
      blocks.append(m.T)                               # right-multiply form
  bmat = np.concatenate(blocks, axis=1).astype(np.float32)     # (HW, 4*HW)

  # Flattened-spatial shift matrices (right multiplication), packed as one
  # (HW, 2*HW) matrix so both shifts come out of a single matmul:
  #   lanes [0,   HW): x_flat @ s_w : image shifted one column left (zero last col)
  #   lanes [HW, 2HW): x_flat @ s_h : image shifted one row up      (zero last row)
  s_w = np.kron(np.eye(H, dtype=np.float32), np.eye(W, k=-1, dtype=np.float32))
  s_h = np.kron(np.eye(H, k=-1, dtype=np.float32), np.eye(W, dtype=np.float32))
  smat = np.concatenate([s_w, s_h], axis=1).astype(np.float32)  # (HW, 2*HW)

  return jnp.asarray(bmat), jnp.asarray(smat)


# ----------------------------------------------------------------------------
# Pallas kernel (entire batch in one step; batch folded onto sublanes)
# ----------------------------------------------------------------------------
def _upsample_kernel(alpha_ref,                     # SMEM (2,)  PReLU slopes
                     x_ref,                         # (NC, HW)
                     w1_ref, b1_ref,                # (NC, NC), (NC, 1)
                     wt_ref, bt_ref,                # (3, 3, NC, NC), (NC, 1)
                     w2_ref, w3_ref, bout_ref,      # (NCo, NC), (NCo, NC), (NCo, 1)
                     smat_ref,                      # (HW, 2*HW) combined shifts
                     bmat_ref,                      # (HW, 4*HW) bilinear matrix
                     out_ref):                      # (NCo, 4*HW)
  a1 = alpha_ref[0]
  a2 = alpha_ref[1]
  HW = bmat_ref.shape[0]

  def prelu(v, a):
    return jnp.where(v >= 0, v, a * v)

  def mm(a, b):
    return jnp.dot(a, b, preferred_element_type=jnp.float32)

  x = x_ref[...]                                     # (NC, HW)

  # ---- top branch: 1x1 conv + PReLU ---------------------------------------
  h = prelu(mm(w1_ref[...], x) + b1_ref[...], a1)    # (NC, HW)

  # ---- top branch: ConvTranspose2d(3x3, stride 2, pad 1, output_pad 1) ----
  # Both independent one-pixel shifts in one matmul, lane blocks [col | row].
  sh = mm(h, smat_ref[...])                          # (NC, 2*HW)
  h_sw = sh[:, :HW]                                  # h[p, q+1]
  h_sh = sh[:, HW:]                                  # h[p+1, q]
  h_shw = mm(h_sw, smat_ref[:, HW:])                 # h[p+1, q+1]

  # Output parity classes (r = output-row parity, c = output-col parity);
  # wt[ky, kx] is the (block-diag) channel-mixing matrix of tap (ky, kx).
  wt = wt_ref[...]
  sub_ee = mm(wt[1, 1], h)
  sub_eo = mm(wt[1, 2], h) + mm(wt[1, 0], h_sw)
  sub_oe = mm(wt[2, 1], h) + mm(wt[0, 1], h_sh)
  sub_oo = (mm(wt[2, 2], h) + mm(wt[2, 0], h_sw)
            + mm(wt[0, 2], h_sh) + mm(wt[0, 0], h_shw))

  # Lane-concatenate the four parity classes: (NC, 4*HW), columns [EE|EO|OE|OO]
  # (each block is 128-lane aligned).
  sub = jnp.concatenate([sub_ee, sub_eo, sub_oe, sub_oo], axis=1) + bt_ref[...]
  top = mm(w2_ref[...], prelu(sub, a2))              # (NCo, 4*HW)

  # ---- bottom branch: 1x1 conv, then bilinear x2 as one matmul ------------
  # (1x1 conv and bilinear resample commute; both final biases are folded
  #  into bout and added once at the end.)
  g = mm(w3_ref[...], x)                             # (NCo, HW)
  bot = mm(g, bmat_ref[...])                         # (NCo, 4*HW)

  out_ref[...] = top + bot + bout_ref[...]


# ----------------------------------------------------------------------------
# Wrapper
# ----------------------------------------------------------------------------
def transformer_upsample_pallas(x, params):
  """x: (N, C, H, W) float32 -> (N, C//2, 2H, 2W) float32."""
  N, C, H, W = x.shape
  Cout = C // 2
  HW = H * W
  NC = N * C
  NCo = N * Cout

  bmat, smat = _make_structure_matrices(H, W)

  def bd(w):
    """Block-diagonal over the batch (kron(I_N, w)); batch-major rows/cols."""
    eye = jnp.eye(N, dtype=w.dtype)
    if w.ndim == 2:
      o, i = w.shape
      return jnp.einsum("pq,oi->poqi", eye, w).reshape(N * o, N * i)
    kh, kw, o, i = w.shape
    return jnp.einsum("pq,hkoi->hkpoqi", eye, w).reshape(kh, kw, N * o, N * i)

  def bvec(b):
    return jnp.tile(b, N).reshape(-1, 1)

  # Host-side layout prep only (tiny weight kron/reshape + free input reshape).
  x_flat = x.reshape(NC, HW)
  w1 = bd(params["w1"])                                        # (NC, NC)
  b1 = bvec(params["b1"])                                      # (NC, 1)
  wt_taps = bd(jnp.transpose(params["wt"], (2, 3, 1, 0)))      # (3, 3, NC, NC)
  bt = bvec(params["bt"])                                      # (NC, 1)
  w2 = bd(params["w2"])                                        # (NCo, NC)
  w3 = bd(params["w3"])                                        # (NCo, NC)
  bout = bvec(params["b2"] + params["b3"])                     # (NCo, 1)  folded
  alphas = jnp.stack([params["a1"], params["a2"]]).astype(jnp.float32)

  out_flat = pl.pallas_call(
      _upsample_kernel,
      out_shape=jax.ShapeDtypeStruct((NCo, 4 * HW), jnp.float32),
      grid_spec=pltpu.PrefetchScalarGridSpec(
          num_scalar_prefetch=0,
          grid=(1,),
          in_specs=[
              pl.BlockSpec(memory_space=pltpu.MemorySpace.SMEM),     # PReLU slopes
              pl.BlockSpec((NC, HW), lambda n: (0, 0)),              # x
              pl.BlockSpec((NC, NC), lambda n: (0, 0)),              # w1 (block-diag)
              pl.BlockSpec((NC, 1), lambda n: (0, 0)),               # b1
              pl.BlockSpec((3, 3, NC, NC), lambda n: (0, 0, 0, 0)),  # convT taps
              pl.BlockSpec((NC, 1), lambda n: (0, 0)),               # convT bias
              pl.BlockSpec((NCo, NC), lambda n: (0, 0)),             # w2
              pl.BlockSpec((NCo, NC), lambda n: (0, 0)),             # w3
              pl.BlockSpec((NCo, 1), lambda n: (0, 0)),              # folded bias
              pl.BlockSpec((HW, 2 * HW), lambda n: (0, 0)),          # shift matrix
              pl.BlockSpec((HW, 4 * HW), lambda n: (0, 0)),          # bilinear mat
          ],
          out_specs=pl.BlockSpec((NCo, 4 * HW), lambda n: (0, 0)),
      ),
      compiler_params=pltpu.CompilerParams(
          dimension_semantics=("arbitrary",),
          vmem_limit_bytes=64 * 1024 * 1024,
      ),
  )(alphas, x_flat, w1, b1, wt_taps, bt, w2, w3, bout, smat, bmat)

  # Parity-ordered flat output -> (N, C//2, 2H, 2W).  Tiny XLA reassembly.
  out = out_flat.reshape(N, Cout, 2, 2, H, W)
  out = jnp.transpose(out, (0, 1, 4, 2, 5, 3))
  return out.reshape(N, Cout, 2 * H, 2 * W)


# ----------------------------------------------------------------------------
# Synthetic parameters (PyTorch layouts) and pure-JAX reference
# ----------------------------------------------------------------------------
def init_params(key, C):
  Cout = C // 2
  ks = jax.random.split(key, 8)
  s = 0.1
  return {
      "w1": s * jax.random.normal(ks[0], (C, C), jnp.float32),         # Conv2d(C,C,1)
      "b1": s * jax.random.normal(ks[1], (C,), jnp.float32),
      "a1": jnp.array(0.25, jnp.float32),                              # PReLU
      "wt": s * jax.random.normal(ks[2], (C, C, 3, 3), jnp.float32),   # ConvTranspose2d (Cin,Cout,3,3)
      "bt": s * jax.random.normal(ks[3], (C,), jnp.float32),
      "a2": jnp.array(0.1, jnp.float32),                               # PReLU
      "w2": s * jax.random.normal(ks[4], (Cout, C), jnp.float32),      # Conv2d(C,C//2,1)
      "b2": s * jax.random.normal(ks[5], (Cout,), jnp.float32),
      "w3": s * jax.random.normal(ks[6], (Cout, C), jnp.float32),      # bot Conv2d(C,C//2,1)
      "b3": s * jax.random.normal(ks[7], (Cout,), jnp.float32),
  }


def _upsample_bilinear_x2_align_corners(v):
  """Reference bilinear x2 upsample with align_corners=True, NCHW."""
  N, C, H, W = v.shape

  def idx(n_in, n_out):
    if n_in == 1:
      z = jnp.zeros((n_out,), jnp.int32)
      return z, z, jnp.zeros((n_out,), jnp.float32)
    src = jnp.arange(n_out, dtype=jnp.float32) * (n_in - 1) / (n_out - 1)
    i0 = jnp.clip(jnp.floor(src).astype(jnp.int32), 0, n_in - 1)
    i1 = jnp.minimum(i0 + 1, n_in - 1)
    return i0, i1, src - i0.astype(jnp.float32)

  y0, y1, fy = idx(H, 2 * H)
  x0, x1, fx = idx(W, 2 * W)
  rows = (v[:, :, y0, :] * (1.0 - fy)[None, None, :, None]
          + v[:, :, y1, :] * fy[None, None, :, None])
  out = (rows[:, :, :, x0] * (1.0 - fx)[None, None, None, :]
         + rows[:, :, :, x1] * fx[None, None, None, :])
  return out


def transformer_upsample_reference(x, params):
  """Pure-JAX reference matching the PyTorch forward."""

  def conv1x1(v, w, b):
    return jnp.einsum("nchw,oc->nohw", v, w) + b[None, :, None, None]

  def prelu(v, a):
    return jnp.where(v >= 0, v, a * v)

  # top branch
  h = prelu(conv1x1(x, params["w1"], params["b1"]), params["a1"])
  wt = params["wt"]                                            # (Cin, Cout, 3, 3)
  k = jnp.transpose(wt[:, :, ::-1, ::-1], (2, 3, 0, 1))        # (3, 3, Cin, Cout)
  h = lax.conv_general_dilated(
      h, k, window_strides=(1, 1), padding=((1, 2), (1, 2)),
      lhs_dilation=(2, 2),
      dimension_numbers=("NCHW", "HWIO", "NCHW"),
  ) + params["bt"][None, :, None, None]
  h = prelu(h, params["a2"])
  top = conv1x1(h, params["w2"], params["b2"])

  # bot branch
  up = _upsample_bilinear_x2_align_corners(x)
  bot = conv1x1(up, params["w3"], params["b3"])
  return top + bot


if __name__ == "__main__":
  N, C, H, W = 2, 4, 16, 16
  key = jax.random.PRNGKey(0)
  kx, kp = jax.random.split(key)
  x = jax.random.normal(kx, (N, C, H, W), jnp.float32)
  params = init_params(kp, C)

  out = transformer_upsample_pallas(x, params)
  out = jax.block_until_ready(out)

  ref = transformer_upsample_reference(x, params)
  assert out.shape == (N, C // 2, 2 * H, 2 * W), out.shape
  max_err = float(jnp.max(jnp.abs(out - ref)))
  # Loose-ish tolerance: TPU MXU matmuls/convs run at default (bf16-pass)
  # precision on both the kernel and the reference paths.
  assert jnp.allclose(out, ref, atol=2e-2, rtol=2e-2), (
      f"mismatch vs reference (max abs err {max_err})")

  print("KERNEL_OK")
</pallas_src>

<mosaic_0001>
module attributes {stable_mosaic.version = 11 : i64} {
  func.func @_upsample_kernel(%arg0: i32, %arg1: memref<2xf32, #tpu.memory_space<smem>>, %arg2: memref<8x256xf32, #tpu.memory_space<vmem>>, %arg3: memref<8x8xf32, #tpu.memory_space<vmem>>, %arg4: memref<8x1xf32, #tpu.memory_space<vmem>>, %arg5: memref<3x3x8x8xf32, #tpu.memory_space<vmem>>, %arg6: memref<8x1xf32, #tpu.memory_space<vmem>>, %arg7: memref<4x8xf32, #tpu.memory_space<vmem>>, %arg8: memref<4x8xf32, #tpu.memory_space<vmem>>, %arg9: memref<4x1xf32, #tpu.memory_space<vmem>>, %arg10: memref<256x512xf32, #tpu.memory_space<vmem>>, %arg11: memref<256x1024xf32, #tpu.memory_space<vmem>>, %arg12: memref<4x1024xf32, #tpu.memory_space<vmem>>) attributes {dimension_semantics = [#tpu.dimension_semantics<arbitrary>], iteration_bounds = array<i64: 1>, scalar_prefetch = 0 : i64, scratch_operands = 0 : i64, tpu.core_type = #tpu.core_type<tc>, window_params = [{transform_indices = @transform_0, window_bounds = array<i64: 2>}, {pipeline_mode = #tpu.pipeline_mode<synchronous>, transform_indices = @transform_1, window_bounds = array<i64: 8, 256>}, {pipeline_mode = #tpu.pipeline_mode<synchronous>, transform_indices = @transform_2, window_bounds = array<i64: 8, 8>}, {pipeline_mode = #tpu.pipeline_mode<synchronous>, transform_indices = @transform_3, window_bounds = array<i64: 8, 1>}, {pipeline_mode = #tpu.pipeline_mode<synchronous>, transform_indices = @transform_4, window_bounds = array<i64: 3, 3, 8, 8>}, {pipeline_mode = #tpu.pipeline_mode<synchronous>, transform_indices = @transform_5, window_bounds = array<i64: 8, 1>}, {pipeline_mode = #tpu.pipeline_mode<synchronous>, transform_indices = @transform_6, window_bounds = array<i64: 4, 8>}, {pipeline_mode = #tpu.pipeline_mode<synchronous>, transform_indices = @transform_7, window_bounds = array<i64: 4, 8>}, {pipeline_mode = #tpu.pipeline_mode<synchronous>, transform_indices = @transform_8, window_bounds = array<i64: 4, 1>}, {pipeline_mode = #tpu.pipeline_mode<synchronous>, transform_indices = @transform_9, window_bounds = array<i64: 256, 512>}, {pipeline_mode = #tpu.pipeline_mode<synchronous>, transform_indices = @transform_10, window_bounds = array<i64: 256, 1024>}, {pipeline_mode = #tpu.pipeline_mode<synchronous>, transform_indices = @transform_11, window_bounds = array<i64: 4, 1024>}]} {
    %c0 = arith.constant 0 : index
    %0 = memref.load %arg1[%c0] : memref<2xf32, #tpu.memory_space<smem>>
    %c1 = arith.constant 1 : index
    %1 = memref.load %arg1[%c1] : memref<2xf32, #tpu.memory_space<smem>>
    %c0_0 = arith.constant 0 : index
    %c0_1 = arith.constant 0 : index
    %2 = vector.load %arg2[%c0_0, %c0_1] : memref<8x256xf32, #tpu.memory_space<vmem>>, vector<8x256xf32>
    %c0_2 = arith.constant 0 : index
    %c0_3 = arith.constant 0 : index
    %3 = vector.load %arg3[%c0_2, %c0_3] : memref<8x8xf32, #tpu.memory_space<vmem>>, vector<8x8xf32>
    %cst = arith.constant dense<0.000000e+00> : vector<8x256xf32>
    %4 = tpu.matmul %3, %2, %cst {dimension_numbers = #tpu.dot_dimension_numbers<[1], [0], [0], [1], [0, 0, 1, 1], [], []>} : vector<8x8xf32>, vector<8x256xf32>, vector<8x256xf32> -> vector<8x256xf32>
    %c0_4 = arith.constant 0 : index
    %c0_5 = arith.constant 0 : index
    %5 = vector.load %arg4[%c0_4, %c0_5] : memref<8x1xf32, #tpu.memory_space<vmem>>, vector<8x1xf32>
    %6 = vector.broadcast %5 : vector<8x1xf32> to vector<8x256xf32>
    %7 = arith.addf %4, %6 : vector<8x256xf32>
    %cst_6 = arith.constant 0.000000e+00 : f32
    %8 = vector.broadcast %cst_6 : f32 to vector<8x256xf32>
    %9 = arith.cmpf oge, %7, %8 : vector<8x256xf32>
    %10 = vector.broadcast %0 : f32 to vector<8x256xf32>
    %11 = arith.mulf %10, %7 : vector<8x256xf32>
    %12 = arith.select %9, %7, %11 : vector<8x256xi1>, vector<8x256xf32>
    %c0_7 = arith.constant 0 : index
    %c0_8 = arith.constant 0 : index
    %13 = vector.load %arg10[%c0_7, %c0_8] : memref<256x512xf32, #tpu.memory_space<vmem>>, vector<256x512xf32>
    %cst_9 = arith.constant dense<0.000000e+00> : vector<8x512xf32>
    %14 = tpu.matmul %12, %13, %cst_9 {dimension_numbers = #tpu.dot_dimension_numbers<[1], [0], [0], [1], [0, 0, 1, 1], [], []>} : vector<8x256xf32>, vector<256x512xf32>, vector<8x512xf32> -> vector<8x512xf32>
    %15 = vector.extract_strided_slice %14 {offsets = [0, 0], sizes = [8, 256], strides = [1, 1]} : vector<8x512xf32> to vector<8x256xf32>
    %16 = vector.extract_strided_slice %14 {offsets = [0, 256], sizes = [8, 256], strides = [1, 1]} : vector<8x512xf32> to vector<8x256xf32>
    %c0_10 = arith.constant 0 : index
    %c256 = arith.constant 256 : index
    %17 = vector.load %arg10[%c0_10, %c256] : memref<256x512xf32, #tpu.memory_space<vmem>>, vector<256x256xf32>
    %cst_11 = arith.constant dense<0.000000e+00> : vector<8x256xf32>
    %18 = tpu.matmul %15, %17, %cst_11 {dimension_numbers = #tpu.dot_dimension_numbers<[1], [0], [0], [1], [0, 0, 1, 1], [], []>} : vector<8x256xf32>, vector<256x256xf32>, vector<8x256xf32> -> vector<8x256xf32>
    %c0_12 = arith.constant 0 : index
    %c0_13 = arith.constant 0 : index
    %c0_14 = arith.constant 0 : index
    %c0_15 = arith.constant 0 : index
    %19 = vector.load %arg5[%c0_12, %c0_13, %c0_14, %c0_15] : memref<3x3x8x8xf32, #tpu.memory_space<vmem>>, vector<3x3x8x8xf32>
    %20 = vector.extract_strided_slice %19 {offsets = [1, 1, 0, 0], sizes = [1, 1, 8, 8], strides = [1, 1, 1, 1]} : vector<3x3x8x8xf32> to vector<1x1x8x8xf32>
    %21 = vector.shape_cast %20 : vector<1x1x8x8xf32> to vector<8x8xf32>
    %cst_16 = arith.constant dense<0.000000e+00> : vector<8x256xf32>
    %22 = tpu.matmul %21, %12, %cst_16 {dimension_numbers = #tpu.dot_dimension_numbers<[1], [0], [0], [1], [0, 0, 1, 1], [], []>} : vector<8x8xf32>, vector<8x256xf32>, vector<8x256xf32> -> vector<8x256xf32>
    %23 = vector.extract_strided_slice %19 {offsets = [1, 2, 0, 0], sizes = [1, 1, 8, 8], strides = [1, 1, 1, 1]} : vector<3x3x8x8xf32> to vector<1x1x8x8xf32>
    %24 = vector.shape_cast %23 : vector<1x1x8x8xf32> to vector<8x8xf32>
    %cst_17 = arith.constant dense<0.000000e+00> : vector<8x256xf32>
    %25 = tpu.matmul %24, %12, %cst_17 {dimension_numbers = #tpu.dot_dimension_numbers<[1], [0], [0], [1], [0, 0, 1, 1], [], []>} : vector<8x8xf32>, vector<8x256xf32>, vector<8x256xf32> -> vector<8x256xf32>
    %26 = vector.extract_strided_slice %19 {offsets = [1, 0, 0, 0], sizes = [1, 1, 8, 8], strides = [1, 1, 1, 1]} : vector<3x3x8x8xf32> to vector<1x1x8x8xf32>
    %27 = vector.shape_cast %26 : vector<1x1x8x8xf32> to vector<8x8xf32>
    %cst_18 = arith.constant dense<0.000000e+00> : vector<8x256xf32>
    %28 = tpu.matmul %27, %15, %cst_18 {dimension_numbers = #tpu.dot_dimension_numbers<[1], [0], [0], [1], [0, 0, 1, 1], [], []>} : vector<8x8xf32>, vector<8x256xf32>, vector<8x256xf32> -> vector<8x256xf32>
    %29 = arith.addf %25, %28 : vector<8x256xf32>
    %30 = vector.extract_strided_slice %19 {offsets = [2, 1, 0, 0], sizes = [1, 1, 8, 8], strides = [1, 1, 1, 1]} : vector<3x3x8x8xf32> to vector<1x1x8x8xf32>
    %31 = vector.shape_cast %30 : vector<1x1x8x8xf32> to vector<8x8xf32>
    %cst_19 = arith.constant dense<0.000000e+00> : vector<8x256xf32>
    %32 = tpu.matmul %31, %12, %cst_19 {dimension_numbers = #tpu.dot_dimension_numbers<[1], [0], [0], [1], [0, 0, 1, 1], [], []>} : vector<8x8xf32>, vector<8x256xf32>, vector<8x256xf32> -> vector<8x256xf32>
    %33 = vector.extract_strided_slice %19 {offsets = [0, 1, 0, 0], sizes = [1, 1, 8, 8], strides = [1, 1, 1, 1]} : vector<3x3x8x8xf32> to vector<1x1x8x8xf32>
    %34 = vector.shape_cast %33 : vector<1x1x8x8xf32> to vector<8x8xf32>
    %cst_20 = arith.constant dense<0.000000e+00> : vector<8x256xf32>
    %35 = tpu.matmul %34, %16, %cst_20 {dimension_numbers = #tpu.dot_dimension_numbers<[1], [0], [0], [1], [0, 0, 1, 1], [], []>} : vector<8x8xf32>, vector<8x256xf32>, vector<8x256xf32> -> vector<8x256xf32>
    %36 = arith.addf %32, %35 : vector<8x256xf32>
    %37 = vector.extract_strided_slice %19 {offsets = [2, 2, 0, 0], sizes = [1, 1, 8, 8], strides = [1, 1, 1, 1]} : vector<3x3x8x8xf32> to vector<1x1x8x8xf32>
    %38 = vector.shape_cast %37 : vector<1x1x8x8xf32> to vector<8x8xf32>
    %cst_21 = arith.constant dense<0.000000e+00> : vector<8x256xf32>
    %39 = tpu.matmul %38, %12, %cst_21 {dimension_numbers = #tpu.dot_dimension_numbers<[1], [0], [0], [1], [0, 0, 1, 1], [], []>} : vector<8x8xf32>, vector<8x256xf32>, vector<8x256xf32> -> vector<8x256xf32>
    %40 = vector.extract_strided_slice %19 {offsets = [2, 0, 0, 0], sizes = [1, 1, 8, 8], strides = [1, 1, 1, 1]} : vector<3x3x8x8xf32> to vector<1x1x8x8xf32>
    %41 = vector.shape_cast %40 : vector<1x1x8x8xf32> to vector<8x8xf32>
    %cst_22 = arith.constant dense<0.000000e+00> : vector<8x256xf32>
    %42 = tpu.matmul %41, %15, %cst_22 {dimension_numbers = #tpu.dot_dimension_numbers<[1], [0], [0], [1], [0, 0, 1, 1], [], []>} : vector<8x8xf32>, vector<8x256xf32>, vector<8x256xf32> -> vector<8x256xf32>
    %43 = arith.addf %39, %42 : vector<8x256xf32>
    %44 = vector.extract_strided_slice %19 {offsets = [0, 2, 0, 0], sizes = [1, 1, 8, 8], strides = [1, 1, 1, 1]} : vector<3x3x8x8xf32> to vector<1x1x8x8xf32>
    %45 = vector.shape_cast %44 : vector<1x1x8x8xf32> to vector<8x8xf32>
    %cst_23 = arith.constant dense<0.000000e+00> : vector<8x256xf32>
    %46 = tpu.matmul %45, %16, %cst_23 {dimension_numbers = #tpu.dot_dimension_numbers<[1], [0], [0], [1], [0, 0, 1, 1], [], []>} : vector<8x8xf32>, vector<8x256xf32>, vector<8x256xf32> -> vector<8x256xf32>
    %47 = arith.addf %43, %46 : vector<8x256xf32>
    %48 = vector.extract_strided_slice %19 {offsets = [0, 0, 0, 0], sizes = [1, 1, 8, 8], strides = [1, 1, 1, 1]} : vector<3x3x8x8xf32> to vector<1x1x8x8xf32>
    %49 = vector.shape_cast %48 : vector<1x1x8x8xf32> to vector<8x8xf32>
    %cst_24 = arith.constant dense<0.000000e+00> : vector<8x256xf32>
    %50 = tpu.matmul %49, %18, %cst_24 {dimension_numbers = #tpu.dot_dimension_numbers<[1], [0], [0], [1], [0, 0, 1, 1], [], []>} : vector<8x8xf32>, vector<8x256xf32>, vector<8x256xf32> -> vector<8x256xf32>
    %51 = arith.addf %47, %50 : vector<8x256xf32>
    %52 = tpu.concatenate %22, %29, %36, %51 in 1 : vector<8x256xf32>, vector<8x256xf32>, vector<8x256xf32>, vector<8x256xf32> -> vector<8x1024xf32>
    %c0_25 = arith.constant 0 : index
    %c0_26 = arith.constant 0 : index
    %53 = vector.load %arg6[%c0_25, %c0_26] : memref<8x1xf32, #tpu.memory_space<vmem>>, vector<8x1xf32>
    %54 = vector.broadcast %53 : vector<8x1xf32> to vector<8x1024xf32>
    %55 = arith.addf %52, %54 : vector<8x1024xf32>
    %c0_27 = arith.constant 0 : index
    %c0_28 = arith.constant 0 : index
    %56 = vector.load %arg7[%c0_27, %c0_28] : memref<4x8xf32, #tpu.memory_space<vmem>>, vector<4x8xf32>
    %cst_29 = arith.constant 0.000000e+00 : f32
    %57 = vector.broadcast %cst_29 : f32 to vector<8x1024xf32>
    %58 = arith.cmpf oge, %55, %57 : vector<8x1024xf32>
    %59 = vector.broadcast %1 : f32 to vector<8x1024xf32>
    %60 = arith.mulf %59, %55 : vector<8x1024xf32>
    %61 = arith.select %58, %55, %60 : vector<8x1024xi1>, vector<8x1024xf32>
    %cst_30 = arith.constant dense<0.000000e+00> : vector<4x1024xf32>
    %62 = tpu.matmul %56, %61, %cst_30 {dimension_numbers = #tpu.dot_dimension_numbers<[1], [0], [0], [1], [0, 0, 1, 1], [], []>} : vector<4x8xf32>, vector<8x1024xf32>, vector<4x1024xf32> -> vector<4x1024xf32>
    %c0_31 = arith.constant 0 : index
    %c0_32 = arith.constant 0 : index
    %63 = vector.load %arg8[%c0_31, %c0_32] : memref<4x8xf32, #tpu.memory_space<vmem>>, vector<4x8xf32>
    %cst_33 = arith.constant dense<0.000000e+00> : vector<4x256xf32>
    %64 = tpu.matmul %63, %2, %cst_33 {dimension_numbers = #tpu.dot_dimension_numbers<[1], [0], [0], [1], [0, 0, 1, 1], [], []>} : vector<4x8xf32>, vector<8x256xf32>, vector<4x256xf32> -> vector<4x256xf32>
    %c0_34 = arith.constant 0 : index
    %c0_35 = arith.constant 0 : index
    %65 = vector.load %arg11[%c0_34, %c0_35] : memref<256x1024xf32, #tpu.memory_space<vmem>>, vector<256x1024xf32>
    %cst_36 = arith.constant dense<0.000000e+00> : vector<4x1024xf32>
    %66 = tpu.matmul %64, %65, %cst_36 {dimension_numbers = #tpu.dot_dimension_numbers<[1], [0], [0], [1], [0, 0, 1, 1], [], []>} : vector<4x256xf32>, vector<256x1024xf32>, vector<4x1024xf32> -> vector<4x1024xf32>
    %67 = arith.addf %62, %66 : vector<4x1024xf32>
    %c0_37 = arith.constant 0 : index
    %c0_38 = arith.constant 0 : index
    %68 = vector.load %arg9[%c0_37, %c0_38] : memref<4x1xf32, #tpu.memory_space<vmem>>, vector<4x1xf32>
    %69 = vector.broadcast %68 : vector<4x1xf32> to vector<4x1024xf32>
    %70 = arith.addf %67, %69 : vector<4x1024xf32>
    %c0_39 = arith.constant 0 : index
    %c0_40 = arith.constant 0 : index
    %71 = vector.load %arg12[%c0_39, %c0_40] : memref<4x1024xf32, #tpu.memory_space<vmem>>, vector<4x1024xf32>
    tpu.vector_store %arg12[%c0_39, %c0_40], %70 {strides = array<i32>} : memref<4x1024xf32, #tpu.memory_space<vmem>>, vector<4x1024xf32>,
    return
  }
  func.func @transform_0(%arg0: i32) -> i32 {
    %c0_i32 = arith.constant 0 : i32
    %c0_i32_0 = arith.constant 0 : i32
    return %c0_i32 : i32
  }
  func.func @transform_1(%arg0: i32) -> (i32, i32) {
    %c0_i32 = arith.constant 0 : i32
    %c0_i32_0 = arith.constant 0 : i32
    %c0_i32_1 = arith.constant 0 : i32
    return %c0_i32, %c0_i32_0 : i32, i32
  }
  func.func @transform_2(%arg0: i32) -> (i32, i32) {
    %c0_i32 = arith.constant 0 : i32
    %c0_i32_0 = arith.constant 0 : i32
    %c0_i32_1 = arith.constant 0 : i32
    return %c0_i32, %c0_i32_0 : i32, i32
  }
  func.func @transform_3(%arg0: i32) -> (i32, i32) {
    %c0_i32 = arith.constant 0 : i32
    %c0_i32_0 = arith.constant 0 : i32
    %c0_i32_1 = arith.constant 0 : i32
    return %c0_i32, %c0_i32_0 : i32, i32
  }
  func.func @transform_4(%arg0: i32) -> (i32, i32, i32, i32) {
    %c0_i32 = arith.constant 0 : i32
    %c0_i32_0 = arith.constant 0 : i32
    %c0_i32_1 = arith.constant 0 : i32
    %c0_i32_2 = arith.constant 0 : i32
    %c0_i32_3 = arith.constant 0 : i32
    return %c0_i32, %c0_i32_0, %c0_i32_1, %c0_i32_2 : i32, i32, i32, i32
  }
  func.func @transform_5(%arg0: i32) -> (i32, i32) {
    %c0_i32 = arith.constant 0 : i32
    %c0_i32_0 = arith.constant 0 : i32
    %c0_i32_1 = arith.constant 0 : i32
    return %c0_i32, %c0_i32_0 : i32, i32
  }
  func.func @transform_6(%arg0: i32) -> (i32, i32) {
    %c0_i32 = arith.constant 0 : i32
    %c0_i32_0 = arith.constant 0 : i32
    %c0_i32_1 = arith.constant 0 : i32
    return %c0_i32, %c0_i32_0 : i32, i32
  }
  func.func @transform_7(%arg0: i32) -> (i32, i32) {
    %c0_i32 = arith.constant 0 : i32
    %c0_i32_0 = arith.constant 0 : i32
    %c0_i32_1 = arith.constant 0 : i32
    return %c0_i32, %c0_i32_0 : i32, i32
  }
  func.func @transform_8(%arg0: i32) -> (i32, i32) {
    %c0_i32 = arith.constant 0 : i32
    %c0_i32_0 = arith.constant 0 : i32
    %c0_i32_1 = arith.constant 0 : i32
    return %c0_i32, %c0_i32_0 : i32, i32
  }
  func.func @transform_9(%arg0: i32) -> (i32, i32) {
    %c0_i32 = arith.constant 0 : i32
    %c0_i32_0 = arith.constant 0 : i32
    %c0_i32_1 = arith.constant 0 : i32
    return %c0_i32, %c0_i32_0 : i32, i32
  }
  func.func @transform_10(%arg0: i32) -> (i32, i32) {
    %c0_i32 = arith.constant 0 : i32
    %c0_i32_0 = arith.constant 0 : i32
    %c0_i32_1 = arith.constant 0 : i32
    return %c0_i32, %c0_i32_0 : i32, i32
  }
  func.func @transform_11(%arg0: i32) -> (i32, i32) {
    %c0_i32 = arith.constant 0 : i32
    %c0_i32_0 = arith.constant 0 : i32
    %c0_i32_1 = arith.constant 0 : i32
    return %c0_i32, %c0_i32_0 : i32, i32
  }
}

</mosaic_0001>

<bundles_post_ra>
// kernel: tpu_custom_call.1
= control target key start
LH: loop header
LB: loop body
LE: loop exit
PB: predicated region body
PF: predicated region fallthrough
CT: control target
= control target key end

     0   :  { %16 = vsyncpa [#allocation5], 0  ;;  %s3496_s0 = inlined_call_operand.hbm [shape: f32[2], index: 0, kind: input, shape index: {}]   ;;  %s3497_s1 = inlined_call_operand.hbm [shape: f32[8,256], index: 1, kind: input, shape index: {}]   ;;  %s3498_s2 = inlined_call_operand.hbm [shape: f32[8,8], index: 2, kind: input, shape index: {}]   ;;  %s3499_s3 = inlined_call_operand.hbm [shape: f32[8,1], index: 3, kind: input, shape index: {}]   ;;  %s3500_s4 = inlined_call_operand.hbm [shape: f32[3,3,8,8], index: 4, kind: input, shape index: {}]   ;;  %s3501_s5 = inlined_call_operand.hbm [shape: f32[8,1], index: 5, kind: input, shape index: {}]   ;;  %s3502_s6 = inlined_call_operand.hbm [shape: f32[4,8], index: 6, kind: input, shape index: {}]   ;;  %s3503_s7 = inlined_call_operand.hbm [shape: f32[4,8], index: 7, kind: input, shape index: {}]   ;;  %s3504_s8 = inlined_call_operand.hbm [shape: f32[4,1], index: 8, kind: input, shape index: {}]   ;;  %s3505_s9 = inlined_call_operand.hbm [shape: f32[256,512], index: 9, kind: input, shape index: {}]   ;;  %s3506_s10 = inlined_call_operand.hbm [shape: f32[256,1024], index: 10, kind: input, shape index: {}]   ;;  %s3507_s11 = inlined_call_operand.hbm [shape: f32[4,1024], index: 11, kind: output, shape index: {}]  }
   0x1   :  { %17 = vsyncpa [#allocation3], 0 }
   0x2   :  { %18 = vsyncpa [#allocation8], 0 }
   0x3   :  { %19 = vsyncpa [#allocation11], 0 }
   0x4   :  { %20 = vsyncpa [#allocation14], 0 }
   0x5   :  { %21 = vsyncpa [#allocation17], 0 }
   0x6   :  { %22 = vsyncpa [#allocation20], 0 }
   0x7   :  { %23 = vsyncpa [#allocation4], 0  ;;  %s3054_s17 = smov [#allocation7]   ;;  %s3055_s19 = smov [#allocation10]  }
   0x8   :  { %s48_s18 = sshll.u32 %s3054_s17, 4  ;;  %s67_s20 = sshll.u32 %s3055_s19, 4  ;;  %s49_s18 = int_to_ptr.vmem [resolvable:$true] %s48_s18  ;;  %s3134_s20 = int_to_ptr.vmem [resolvable:$true] %s67_s20 }
   0x9   :  { %s2786_s23 = scalar_lea.hbm %s3498_s2, 128 }
   0xa   :  { %p2787_p0 = scmp.ne.s32.totalorder %s3498_s2, %s2786_s23  ;;  %p2790_p1 = scmp.lt.u32.totalorder %s2786_s23, %s3498_s2 }
   0xc   :  { %p2792_p2 = pnand %p2790_p1, %p2787_p0 }
   0xe   :  { %2795 = shalt.err (!%p2792_p2)
}
   0xf   :  { %s2796_s28 = scalar_lea.vmem %s49_s18, 128  ;;  %p2801_p4 = scmp.lt.s32.totalorder %s49_s18, %s49_s18 }
  0x10   :  { %p2797_p3 = scmp.ne.s32.totalorder %s49_s18, %s2796_s28  ;;  %p2802_p5 = scmp.lt.s32.totalorder %s2796_s28, %s2796_s28 }
  0x12   :  { %p2803_p6 = por %p2802_p5, %p2801_p4 }
  0x14   :  { %p2804_p7 = pnand %p2803_p6, %p2797_p3 }
  0x16   :  { %2807 = shalt.err (!%p2804_p7)
}
  0x17   :  { %51 = dma.hbm_to_vmem [thread:$0]  %s3498_s2, 128, %s49_s18, [#allocation8]  }
  0x18   :  { %s2808_s14 = scalar_lea.hbm %s3500_s4, 1152 }
  0x19   :  { %p2809_p8 = scmp.ne.s32.totalorder %s3500_s4, %s2808_s14  ;;  %p2812_p9 = scmp.lt.u32.totalorder %s2808_s14, %s3500_s4 }
  0x1b   :  { %p2814_p10 = pnand %p2812_p9, %p2809_p8 }
  0x1d   :  { %2817 = shalt.err (!%p2814_p10)
}
  0x1e   :  { %s2818_s21 = scalar_lea.vmem %s3134_s20, 1152  ;;  %p2823_p12 = scmp.lt.s32.totalorder %s3134_s20, %s3134_s20 }
  0x1f   :  { %p2819_p11 = scmp.ne.s32.totalorder %s3134_s20, %s2818_s21  ;;  %p2824_p13 = scmp.lt.s32.totalorder %s2818_s21, %s2818_s21 }
  0x21   :  { %p2825_p0 = por %p2824_p13, %p2823_p12 }
  0x23   :  { %p2826_p1 = pnand %p2825_p0, %p2819_p11 }
  0x25   :  { %2829 = shalt.err (!%p2826_p1)
}
  0x26   :  { %s3056_s2 = smov 128   ;;  %s3057_s18 = smov 8  }
  0x27   :  { %73 = dma.hbm_to_vmem [thread:$0]  %s3500_s4, 1152, %s3134_s20, [#allocation11], %s3056_s2, %s3056_s2, %s3057_s18  }
  0x28   :  { %s3058_s24 = smov [#allocation13]   ;;  %s3059_s26 = smov [#allocation16]  }
  0x29   :  { %s90_s25 = sshll.u32 %s3058_s24, 4  ;;  %s110_s27 = sshll.u32 %s3059_s26, 4  ;;  %s91_s25 = int_to_ptr.vmem [resolvable:$true] %s90_s25  ;;  %s111_s27 = int_to_ptr.vmem [resolvable:$true] %s110_s27 }
  0x2a   :  { %s2830_s30 = scalar_lea.hbm %s3502_s6, 64 }
  0x2b   :  { %p2831_p2 = scmp.ne.s32.totalorder %s3502_s6, %s2830_s30  ;;  %p2834_p3 = scmp.lt.u32.totalorder %s2830_s30, %s3502_s6 }
  0x2d   :  { %p2836_p4 = pnand %p2834_p3, %p2831_p2 }
  0x2f   :  { %2839 = shalt.err (!%p2836_p4)
}
  0x30   :  { %s2840_s4 = scalar_lea.vmem %s91_s25, 64  ;;  %p2845_p6 = scmp.lt.s32.totalorder %s91_s25, %s91_s25 }
  0x31   :  { %p2841_p5 = scmp.ne.s32.totalorder %s91_s25, %s2840_s4  ;;  %p2846_p7 = scmp.lt.s32.totalorder %s2840_s4, %s2840_s4 }
  0x33   :  { %p2847_p8 = por %p2846_p7, %p2845_p6 }
  0x35   :  { %p2848_p9 = pnand %p2847_p8, %p2841_p5 }
  0x37   :  { %2851 = shalt.err (!%p2848_p9)
}
  0x38   :  { %93 = dma.hbm_to_vmem [thread:$0]  %s3502_s6, 64, %s91_s25, [#allocation14]  }
  0x39   :  { %s2852_s21 = scalar_lea.hbm %s3504_s8, 64 }
  0x3a   :  { %p2853_p10 = scmp.ne.s32.totalorder %s3504_s8, %s2852_s21  ;;  %p2856_p11 = scmp.lt.u32.totalorder %s2852_s21, %s3504_s8 }
  0x3c   :  { %p2858_p12 = pnand %p2856_p11, %p2853_p10 }
  0x3e   :  { %2861 = shalt.err (!%p2858_p12)
}
  0x3f   :  { %s2862_s24 = scalar_lea.vmem %s111_s27, 64  ;;  %p2867_p0 = scmp.lt.s32.totalorder %s111_s27, %s111_s27 }
  0x40   :  { %p2863_p13 = scmp.ne.s32.totalorder %s111_s27, %s2862_s24  ;;  %p2868_p1 = scmp.lt.s32.totalorder %s2862_s24, %s2862_s24 }
  0x42   :  { %p2869_p2 = por %p2868_p1, %p2867_p0 }
  0x44   :  { %p2870_p3 = pnand %p2869_p2, %p2863_p13 }
  0x46   :  { %2873 = shalt.err (!%p2870_p3)
}
  0x47   :  { %113 = dma.hbm_to_vmem [thread:$0]  %s3504_s8, 64, %s111_s27, [#allocation17]  }
  0x48   :  { %s2874_s29 = scalar_lea.hbm %s3496_s0, 16 }
  0x49   :  { %p2875_p4 = scmp.ne.s32.totalorder %s3496_s0, %s2874_s29  ;;  %p2878_p5 = scmp.lt.u32.totalorder %s2874_s29, %s3496_s0 }
  0x4b   :  { %p2880_p6 = pnand %p2878_p5, %p2875_p4 }
  0x4d   :  { %2883 = shalt.err (!%p2880_p6)
}
  0x4e   :  { %s3060_s15 = smov [#allocation2]   ;;  %s3061_s8 = smov [#allocation6]  }
  0x4f   :  { %31 = dma.hbm_to_smem %s3496_s0, 16, %s3060_s15, [#allocation5]  }
  0x50   :  { %s38_s27 = sshll.u32 %s3061_s8, 4  ;;  %s3062_s16 = smov [#allocation9]   ;;  %s39_s27 = int_to_ptr.vmem [resolvable:$true] %s38_s27 }
  0x51   :  { %s58_s17 = sshll.u32 %s3062_s16, 4  ;;  %s2884_s2 = scalar_lea.hbm %s3497_s1, 256  ;;  %s59_s17 = int_to_ptr.vmem [resolvable:$true] %s58_s17 }
  0x52   :  { %p2885_p7 = scmp.ne.s32.totalorder %s3497_s1, %s2884_s2  ;;  %p2888_p8 = scmp.lt.u32.totalorder %s2884_s2, %s3497_s1 }
  0x54   :  { %p2890_p9 = pnand %p2888_p8, %p2885_p7 }
  0x56   :  { %2893 = shalt.err (!%p2890_p9)
}
  0x57   :  { %s2894_s0 = scalar_lea.vmem %s39_s27, 256  ;;  %p2899_p11 = scmp.lt.s32.totalorder %s39_s27, %s39_s27 }
  0x58   :  { %p2895_p10 = scmp.ne.s32.totalorder %s39_s27, %s2894_s0  ;;  %p2900_p12 = scmp.lt.s32.totalorder %s2894_s0, %s2894_s0 }
  0x5a   :  { %p2901_p13 = por %p2900_p12, %p2899_p11 }
  0x5c   :  { %p2902_p0 = pnand %p2901_p13, %p2895_p10 }
  0x5e   :  { %2905 = shalt.err (!%p2902_p0)
}
  0x5f   :  { %41 = dma.hbm_to_vmem [thread:$0]  %s3497_s1, 256, %s39_s27, [#allocation3]  }
  0x60   :  { %s2906_s29 = scalar_lea.hbm %s3499_s3, 128 }
  0x61   :  { %p2907_p1 = scmp.ne.s32.totalorder %s3499_s3, %s2906_s29  ;;  %p2910_p2 = scmp.lt.u32.totalorder %s2906_s29, %s3499_s3 }
  0x63   :  { %p2912_p3 = pnand %p2910_p2, %p2907_p1 }
  0x65   :  { %2915 = shalt.err (!%p2912_p3)
}
  0x66   :  { %s2916_s15 = scalar_lea.vmem %s59_s17, 128  ;;  %p2921_p5 = scmp.lt.s32.totalorder %s59_s17, %s59_s17 }
  0x67   :  { %p2917_p4 = scmp.ne.s32.totalorder %s59_s17, %s2916_s15  ;;  %p2922_p6 = scmp.lt.s32.totalorder %s2916_s15, %s2916_s15 }
  0x69   :  { %p2923_p7 = por %p2922_p6, %p2921_p5 }
  0x6b   :  { %p2924_p8 = pnand %p2923_p7, %p2917_p4 }
  0x6d   :  { %2927 = shalt.err (!%p2924_p8)
}
  0x6e   :  { %61 = dma.hbm_to_vmem [thread:$0]  %s3499_s3, 128, %s59_s17, [#allocation8]  }
  0x6f   :  { %s3063_s20 = smov [#allocation12]   ;;  %s3064_s27 = smov [#allocation15]  }
  0x70   :  { %s80_s8 = sshll.u32 %s3063_s20, 4  ;;  %s100_s16 = sshll.u32 %s3064_s27, 4  ;;  %s81_s8 = int_to_ptr.vmem [resolvable:$true] %s80_s8  ;;  %s101_s16 = int_to_ptr.vmem [resolvable:$true] %s100_s16 }
  0x71   :  { %s2928_s2 = scalar_lea.hbm %s3501_s5, 128 }
  0x72   :  { %p2929_p9 = scmp.ne.s32.totalorder %s3501_s5, %s2928_s2  ;;  %p2932_p10 = scmp.lt.u32.totalorder %s2928_s2, %s3501_s5 }
  0x74   :  { %p2934_p11 = pnand %p2932_p10, %p2929_p9 }
  0x76   :  { %2937 = shalt.err (!%p2934_p11)
}
  0x77   :  { %s2938_s3 = scalar_lea.vmem %s81_s8, 128  ;;  %p2943_p13 = scmp.lt.s32.totalorder %s81_s8, %s81_s8 }
  0x78   :  { %p2939_p12 = scmp.ne.s32.totalorder %s81_s8, %s2938_s3  ;;  %p2944_p0 = scmp.lt.s32.totalorder %s2938_s3, %s2938_s3 }
  0x7a   :  { %p2945_p1 = por %p2944_p0, %p2943_p13 }
  0x7c   :  { %p2946_p2 = pnand %p2945_p1, %p2939_p12 }
  0x7e   :  { %2949 = shalt.err (!%p2946_p2)
}
  0x7f   :  { %83 = dma.hbm_to_vmem [thread:$0]  %s3501_s5, 128, %s81_s8, [#allocation11]  }
  0x80   :  { %s2950_s26 = scalar_lea.hbm %s3503_s7, 64 }
  0x81   :  { %p2951_p3 = scmp.ne.s32.totalorder %s3503_s7, %s2950_s26  ;;  %p2954_p4 = scmp.lt.u32.totalorder %s2950_s26, %s3503_s7 }
  0x83   :  { %p2956_p5 = pnand %p2954_p4, %p2951_p3 }
  0x85   :  { %2959 = shalt.err (!%p2956_p5)
}
  0x86   :  { %s2960_s13 = scalar_lea.vmem %s101_s16, 64  ;;  %p2965_p7 = scmp.lt.s32.totalorder %s101_s16, %s101_s16 }
  0x87   :  { %p2961_p6 = scmp.ne.s32.totalorder %s101_s16, %s2960_s13  ;;  %p2966_p8 = scmp.lt.s32.totalorder %s2960_s13, %s2960_s13 }
  0x89   :  { %p2967_p9 = por %p2966_p8, %p2965_p7 }
  0x8b   :  { %p2968_p10 = pnand %p2967_p9, %p2961_p6 }
  0x8d   :  { %2971 = shalt.err (!%p2968_p10)
}
  0x8e   :  { %103 = dma.hbm_to_vmem [thread:$0]  %s3503_s7, 64, %s101_s16, [#allocation14]  }
  0x8f   :  { %s3065_s15 = smov [#allocation18]   ;;  %s2972_s8 = scalar_lea.hbm %s3505_s9, 16384 }
  0x90   :  { %s119_s1 = sshll.u32 %s3065_s15, 4  ;;  %p2973_p11 = scmp.ne.s32.totalorder %s3505_s9, %s2972_s8  ;;  %s120_s1 = int_to_ptr.vmem [resolvable:$true] %s119_s1 }
  0x91   :  { %p2976_p12 = scmp.lt.u32.totalorder %s2972_s8, %s3505_s9 }
  0x93   :  { %p2978_p13 = pnand %p2976_p12, %p2973_p11 }
  0x95   :  { %2981 = shalt.err (!%p2978_p13)
}
  0x96   :  { %s2982_s18 = scalar_lea.vmem %s120_s1, 16384  ;;  %p2987_p1 = scmp.lt.s32.totalorder %s120_s1, %s120_s1 }
  0x97   :  { %p2983_p0 = scmp.ne.s32.totalorder %s120_s1, %s2982_s18  ;;  %p2988_p2 = scmp.lt.s32.totalorder %s2982_s18, %s2982_s18 }
  0x99   :  { %p2989_p3 = por %p2988_p2, %p2987_p1 }
  0x9b   :  { %p2990_p4 = pnand %p2989_p3, %p2983_p0 }
  0x9d   :  { %2993 = shalt.err (!%p2990_p4)
}
  0x9e   :  { %s3066_s7 = smov 512   ;;  %s3067_s16 = smov 32  }
  0x9f   :  { %125 = dma.hbm_to_vmem [thread:$0]  %s3505_s9, 16384, %s120_s1, [#allocation17], %s3066_s7, %s3066_s7, %s3067_s16  }
  0xa0   :  { %s3068_s24 = smov [#allocation19]   ;;  %s2994_s6 = scalar_lea.hbm %s3506_s10, 32768 }
  0xa1   :  { %s131_s3 = sshll.u32 %s3068_s24, 4  ;;  %p2995_p5 = scmp.ne.s32.totalorder %s3506_s10, %s2994_s6  ;;  %s132_s3 = int_to_ptr.vmem [resolvable:$true] %s131_s3 }
  0xa2   :  { %p2998_p6 = scmp.lt.u32.totalorder %s2994_s6, %s3506_s10 }
  0xa4   :  { %p3000_p7 = pnand %p2998_p6, %p2995_p5 }
  0xa6   :  { %3003 = shalt.err (!%p3000_p7)
}
  0xa7   :  { %s3004_s30 = scalar_lea.vmem %s132_s3, 32768  ;;  %p3009_p9 = scmp.lt.s32.totalorder %s132_s3, %s132_s3 }
  0xa8   :  { %p3005_p8 = scmp.ne.s32.totalorder %s132_s3, %s3004_s30  ;;  %p3010_p10 = scmp.lt.s32.totalorder %s3004_s30, %s3004_s30 }
  0xaa   :  { %p3011_p11 = por %p3010_p10, %p3009_p9 }
  0xac   :  { %p3012_p12 = pnand %p3011_p11, %p3005_p8 }
  0xae   :  { %3015 = shalt.err (!%p3012_p12)
}
  0xaf   :  { %s3069_s9 = smov 1024   ;;  %s3070_s12 = smov 64  }
  0xb0   :  { %137 = dma.hbm_to_vmem [thread:$0]  %s3506_s10, 32768, %s132_s3, [#allocation20], %s3069_s9, %s3069_s9, %s3070_s12  }
  0xb1   :  { %3038 = dma.done.wait [#allocation5], 16  }
  0xb2   :  { %3039 = vsyncadd [#allocation5], 4294967280 }
  0xb3   :  { %3040 = dma.done.wait [#allocation3], 256  }
  0xb4   :  { %3041 = vsyncadd [#allocation3], 4294967040 }
  0xb5   :  { %3042 = dma.done.wait [#allocation8], 256  }
  0xb6   :  { %3043 = vsyncadd [#allocation8], 4294967040 }
  0xb7   :  { %3044 = dma.done.wait [#allocation11], 1280  }
  0xb8   :  { %3045 = vsyncadd [#allocation11], 4294966016 }
  0xb9   :  { %3046 = dma.done.wait [#allocation14], 128  }
  0xba   :  { %3047 = vsyncadd [#allocation14], 4294967168 }
  0xbb   :  { %3048 = dma.done.wait [#allocation17], 16448  }
  0xbc   :  { %3049 = vsyncadd [#allocation17], 4294950848 }
  0xbd   :  { %3050 = dma.done.wait [#allocation20], 32768  }
  0xbe   :  { %3051 = vsyncadd [#allocation20], 4294934528 }
  0xbf   :  { %171 = sfence }
  0xc0   :  { %v3273_v0 = vld [vmem:[#allocation6 + $0x8] sm:$0xff]  ;;  %v3275_v1 = vld [vmem:[#allocation6] sm:$0xff]  ;;  %v176_v2 = vld [vmem:[#allocation7] sm:$0xff]  ;;  %vm183_vm0 = vcmask 64512   ;;  %v3071_v3 = vmov 0.0   ;;  %v3072_v6 = vmov 0  }
  0xc1   :  { %187 = vmatprep.subr.mxu0 %v3273_v0  ;;  %251 = vmatprep.mubr.f32.mxu0 %v3071_v3  ;;  %v177_v4 = vld [vmem:[#allocation9] sm:$0xff]  ;;  %v1285_v7 = vld [vmem:[#allocation12] sm:$0xff]  ;;  %s172_s10 = sld [smem:[#allocation2]]  ;;  %s3463_s14 = sld [smem:[#allocation2 + $0x1]] }
  0xc2   :  { %v268_v5 = vld [vmem:[#allocation18 + $0x18] sm:$0xff]  ;;  %188 = vmatpush1.msra.mxu0 %v3275_v1  ;;  %2784 = vset.pattern.permute.xlu0 %v3072_v6  ;;  %v266_v9 = vld [vmem:[#allocation18 + $0x8] sm:$0xff]  ;;  %v267_v13 = vld [vmem:[#allocation18 + $0x10] sm:$0xff]  ;;  %s3073_s15 = smov [#allocation21]  }
  0xc3   :  { %v272_v8 = vld [vmem:[#allocation18 + $0x38] sm:$0xff]  ;;  %v270_v10 = vld [vmem:[#allocation18 + $0x28] sm:$0xff]  ;;  %2283 = vmatmul.mubr.msk.f32.vlgmr.msra.gmra.mrb[0].mxu0 %vm183_vm0, %v176_v2  ;;  %180 = vperm.xlu0 %2784, %v177_v4   ;;  %v271_v14 = vld [vmem:[#allocation18 + $0x30] sm:$0xff]  ;;  %s2267_s1 = sshll.u32 %s3073_s15, 4  ;;  %s2268_s1 = int_to_ptr.vmem [resolvable:$true] %s2267_s1 }
  0xc4   :  { %v3281_v11 = vpack.c.bf16 %v272_v8, %v268_v5  ;;  %v2298_v12 = vpack.c.bf16 %v270_v10, %v266_v9  ;;  %v265_v15 = vld [vmem:[#allocation18] sm:$0xff]  ;;  %v3283_v16 = vpack.c.bf16 %v271_v14, %v267_v13  ;;  %v276_v18 = vld [vmem:[#allocation18 + $0x58] sm:$0xff]  ;;  %2785 = vset.pattern.permute.xlu1 %v3072_v6  ;;  %v274_v22 = vld [vmem:[#allocation18 + $0x48] sm:$0xff]  ;;  %s3016_s4 = scalar_lea.vmem %s2268_s1, 512  ;;  %p3021_p0 = scmp.lt.s32.totalorder %s2268_s1, %s2268_s1 }
  0xc5   :  { %v269_v17 = vld [vmem:[#allocation18 + $0x20] sm:$0xff]  ;;  %v280_v19 = vld [vmem:[#allocation18 + $0x78] sm:$0xff]  ;;  %v278_v23 = vld [vmem:[#allocation18 + $0x68] sm:$0xff]  ;;  %p3017_p13 = scmp.ne.s32.totalorder %s2268_s1, %s3016_s4  ;;  %p3022_p1 = scmp.lt.s32.totalorder %s3016_s4, %s3016_s4 }
  0xc6   :  { %2363 = vmatprep.subr.bf16.mxu0 %v3281_v11  ;;  %2299 = vmatprep.subr.bf16.mxu1 %v2298_v12  ;;  %v2300_v20 = vpack.c.bf16 %v269_v17, %v265_v15  ;;  %v3286_v21 = vpack.c.bf16 %v280_v19, %v276_v18  ;;  %v275_v24 = vld [vmem:[#allocation18 + $0x50] sm:$0xff]  ;;  %v2302_v25 = vpack.c.bf16 %v278_v23, %v274_v22  ;;  %v273_v27 = vld [vmem:[#allocation18 + $0x40] sm:$0xff]  ;;  %v284_v31 = vld [vmem:[#allocation18 + $0x98] sm:$0xff] }
  0xc7   :  { %2365 = vmatpush1.bf16.msra.mxu0 %v3283_v16  ;;  %v279_v26 = vld [vmem:[#allocation18 + $0x70] sm:$0xff]  ;;  %v277_v28 = vld [vmem:[#allocation18 + $0x60] sm:$0xff]  ;;  %1288 = vperm.xlu0 %2784, %v1285_v7   ;;  %v288_v32 = vld [vmem:[#allocation18 + $0xb8] sm:$0xff]  ;;  %p3023_p2 = por %p3022_p1, %p3021_p0 }
  0xc8   :  { %2301 = vmatpush1.bf16.msra.mxu1 %v2300_v20  ;;  %v3289_v29 = vpack.c.bf16 %v279_v26, %v275_v24  ;;  %v2304_v30 = vpack.c.bf16 %v277_v28, %v273_v27  ;;  %v282_v33 = vld [vmem:[#allocation18 + $0x88] sm:$0xff]  ;;  %2367 = vmatprep.subr.bf16.mxu0 %v3286_v21  ;;  %v3292_v34 = vpack.c.bf16 %v288_v32, %v284_v31  ;;  %v283_v36 = vld [vmem:[#allocation18 + $0x90] sm:$0xff]  ;;  %v281_v39 = vld [vmem:[#allocation18 + $0x80] sm:$0xff] }
  0xc9   :  { %2303 = vmatprep.subr.bf16.mxu1 %v2302_v25  ;;  %v286_v35 = vld [vmem:[#allocation18 + $0xa8] sm:$0xff]  ;;  %v287_v37 = vld [vmem:[#allocation18 + $0xb0] sm:$0xff]  ;;  %v285_v40 = vld [vmem:[#allocation18 + $0xa0] sm:$0xff]  ;;  %p3024_p3 = pnand %p3023_p2, %p3017_p13 }
  0xca   :  { %v2306_v38 = vpack.c.bf16 %v286_v35, %v282_v33  ;;  %v292_v41 = vld [vmem:[#allocation18 + $0xd8] sm:$0xff]  ;;  %v3295_v42 = vpack.c.bf16 %v287_v37, %v283_v36  ;;  %v290_v44 = vld [vmem:[#allocation18 + $0xc8] sm:$0xff]  ;;  %v2308_v46 = vpack.c.bf16 %v285_v40, %v281_v39  ;;  %v291_v48 = vld [vmem:[#allocation18 + $0xd0] sm:$0xff] }
  0xcb   :  { %2369 = vmatpush1.bf16.msra.mxu0 %v3289_v29  ;;  %v296_v43 = vld [vmem:[#allocation18 + $0xf8] sm:$0xff]  ;;  %v294_v45 = vld [vmem:[#allocation18 + $0xe8] sm:$0xff]  ;;  %v295_v49 = vld [vmem:[#allocation18 + $0xf0] sm:$0xff] }
  0xcc   :  { %2305 = vmatpush1.bf16.msra.mxu1 %v2304_v30  ;;  %2371 = vmatprep.subr.bf16.mxu0 %v3292_v34  ;;  %v3298_v47 = vpack.c.bf16 %v296_v43, %v292_v41  ;;  %v289_v50 = vld [vmem:[#allocation18 + $0xc0] sm:$0xff]  ;;  %v2310_v51 = vpack.c.bf16 %v294_v45, %v290_v44  ;;  %v300_v53 = vld [vmem:[#allocation18 + $0x118] sm:$0xff]  ;;  %v298_v55 = vld [vmem:[#allocation18 + $0x108] sm:$0xff]  ;;  %v3301_v57 = vpack.c.bf16 %v295_v49, %v291_v48 }
  0xcd   :  { %2307 = vmatprep.subr.bf16.mxu1 %v2306_v38  ;;  %v293_v52 = vld [vmem:[#allocation18 + $0xe0] sm:$0xff]  ;;  %v304_v54 = vld [vmem:[#allocation18 + $0x138] sm:$0xff]  ;;  %v302_v56 = vld [vmem:[#allocation18 + $0x128] sm:$0xff] }
  0xce   :  { %v2312_v58 = vpack.c.bf16 %v293_v52, %v289_v50  ;;  %v3304_v59 = vpack.c.bf16 %v304_v54, %v300_v53  ;;  %v299_v60 = vld [vmem:[#allocation18 + $0x110] sm:$0xff]  ;;  %v297_v62 = vld [vmem:[#allocation18 + $0x100] sm:$0xff]  ;;  %v2314_v63 = vpack.c.bf16 %v302_v56, %v298_v55  ;;  %v308_v4 = vld [vmem:[#allocation18 + $0x158] sm:$0xff] }
  0xcf   :  { %2373 = vmatpush1.bf16.msra.mxu0 %v3295_v42  ;;  %v303_v61 = vld [vmem:[#allocation18 + $0x130] sm:$0xff]  ;;  %v301_v2 = vld [vmem:[#allocation18 + $0x120] sm:$0xff]  ;;  %v312_v5 = vld [vmem:[#allocation18 + $0x178] sm:$0xff] }
  0xd0   :  { %2309 = vmatpush1.bf16.msra.mxu1 %v2308_v46  ;;  %2375 = vmatprep.subr.bf16.mxu0 %v3298_v47  ;;  %v306_v6 = vld [vmem:[#allocation18 + $0x148] sm:$0xff]  ;;  %v3307_v8 = vpack.c.bf16 %v303_v61, %v299_v60  ;;  %v2316_v9 = vpack.c.bf16 %v301_v2, %v297_v62  ;;  %v3310_v10 = vpack.c.bf16 %v312_v5, %v308_v4  ;;  %v307_v12 = vld [vmem:[#allocation18 + $0x150] sm:$0xff]  ;;  %v305_v14 = vld [vmem:[#allocation18 + $0x140] sm:$0xff] }
  0xd1   :  { %2311 = vmatprep.subr.bf16.mxu1 %v2310_v51  ;;  %v310_v7 = vld [vmem:[#allocation18 + $0x168] sm:$0xff]  ;;  %v311_v13 = vld [vmem:[#allocation18 + $0x170] sm:$0xff]  ;;  %v309_v17 = vld [vmem:[#allocation18 + $0x160] sm:$0xff] }
  0xd2   :  { %v2318_v15 = vpack.c.bf16 %v310_v7, %v306_v6  ;;  %v316_v18 = vld [vmem:[#allocation18 + $0x198] sm:$0xff]  ;;  %v314_v20 = vld [vmem:[#allocation18 + $0x188] sm:$0xff]  ;;  %v3313_v23 = vpack.c.bf16 %v311_v13, %v307_v12  ;;  %v2320_v24 = vpack.c.bf16 %v309_v17, %v305_v14  ;;  %v315_v26 = vld [vmem:[#allocation18 + $0x190] sm:$0xff] }
  0xd3   :  { %2377 = vmatpush1.bf16.msra.mxu0 %v3301_v57  ;;  %v320_v19 = vld [vmem:[#allocation18 + $0x1b8] sm:$0xff]  ;;  %v318_v22 = vld [vmem:[#allocation18 + $0x1a8] sm:$0xff]  ;;  %v319_v27 = vld [vmem:[#allocation18 + $0x1b0] sm:$0xff] }
  0xd4   :  { %2313 = vmatpush1.bf16.msra.mxu1 %v2312_v58  ;;  %2379 = vmatprep.subr.bf16.mxu0 %v3304_v59  ;;  %v3316_v25 = vpack.c.bf16 %v320_v19, %v316_v18  ;;  %v313_v28 = vld [vmem:[#allocation18 + $0x180] sm:$0xff]  ;;  %v2322_v30 = vpack.c.bf16 %v318_v22, %v314_v20  ;;  %v324_v32 = vld [vmem:[#allocation18 + $0x1d8] sm:$0xff]  ;;  %v322_v35 = vld [vmem:[#allocation18 + $0x1c8] sm:$0xff]  ;;  %v3319_v37 = vpack.c.bf16 %v319_v27, %v315_v26 }
  0xd5   :  { %2315 = vmatprep.subr.bf16.mxu1 %v2314_v63  ;;  %v317_v31 = vld [vmem:[#allocation18 + $0x1a0] sm:$0xff]  ;;  %v328_v33 = vld [vmem:[#allocation18 + $0x1f8] sm:$0xff]  ;;  %v326_v36 = vld [vmem:[#allocation18 + $0x1e8] sm:$0xff] }
  0xd6   :  { %v2324_v38 = vpack.c.bf16 %v317_v31, %v313_v28  ;;  %v3322_v39 = vpack.c.bf16 %v328_v33, %v324_v32  ;;  %v323_v40 = vld [vmem:[#allocation18 + $0x1d0] sm:$0xff]  ;;  %v321_v43 = vld [vmem:[#allocation18 + $0x1c0] sm:$0xff]  ;;  %v2326_v44 = vpack.c.bf16 %v326_v36, %v322_v35  ;;  %v332_v46 = vld [vmem:[#allocation18 + $0x218] sm:$0xff] }
  0xd7   :  { %2381 = vmatpush1.bf16.msra.mxu0 %v3307_v8  ;;  %v327_v41 = vld [vmem:[#allocation18 + $0x1f0] sm:$0xff]  ;;  %v325_v45 = vld [vmem:[#allocation18 + $0x1e0] sm:$0xff]  ;;  %v336_v48 = vld [vmem:[#allocation18 + $0x238] sm:$0xff] }
  0xd8   :  { %2317 = vmatpush1.bf16.msra.mxu1 %v2316_v9  ;;  %2383 = vmatprep.subr.bf16.mxu0 %v3310_v10  ;;  %v330_v49 = vld [vmem:[#allocation18 + $0x208] sm:$0xff]  ;;  %v3325_v51 = vpack.c.bf16 %v327_v41, %v323_v40  ;;  %v2328_v52 = vpack.c.bf16 %v325_v45, %v321_v43  ;;  %v3328_v53 = vpack.c.bf16 %v336_v48, %v332_v46  ;;  %v331_v54 = vld [vmem:[#allocation18 + $0x210] sm:$0xff]  ;;  %v329_v56 = vld [vmem:[#allocation18 + $0x200] sm:$0xff] }
  0xd9   :  { %2319 = vmatprep.subr.bf16.mxu1 %v2318_v15  ;;  %v334_v50 = vld [vmem:[#allocation18 + $0x228] sm:$0xff]  ;;  %v335_v55 = vld [vmem:[#allocation18 + $0x230] sm:$0xff]  ;;  %v333_v60 = vld [vmem:[#allocation18 + $0x220] sm:$0xff] }
  0xda   :  { %v2330_v58 = vpack.c.bf16 %v334_v50, %v330_v49  ;;  %v340_v61 = vld [vmem:[#allocation18 + $0x258] sm:$0xff]  ;;  %v338_v63 = vld [vmem:[#allocation18 + $0x248] sm:$0xff]  ;;  %v3331_v4 = vpack.c.bf16 %v335_v55, %v331_v54  ;;  %v2332_v5 = vpack.c.bf16 %v333_v60, %v329_v56  ;;  %v339_v7 = vld [vmem:[#allocation18 + $0x250] sm:$0xff] }
  0xdb   :  { %2385 = vmatpush1.bf16.msra.mxu0 %v3313_v23  ;;  %v344_v62 = vld [vmem:[#allocation18 + $0x278] sm:$0xff]  ;;  %v342_v2 = vld [vmem:[#allocation18 + $0x268] sm:$0xff]  ;;  %v343_v9 = vld [vmem:[#allocation18 + $0x270] sm:$0xff] }
  0xdc   :  { %2321 = vmatpush1.bf16.msra.mxu1 %v2320_v24  ;;  %2387 = vmatprep.subr.bf16.mxu0 %v3316_v25  ;;  %v3334_v6 = vpack.c.bf16 %v344_v62, %v340_v61  ;;  %v337_v12 = vld [vmem:[#allocation18 + $0x240] sm:$0xff]  ;;  %v2334_v13 = vpack.c.bf16 %v342_v2, %v338_v63  ;;  %v348_v15 = vld [vmem:[#allocation18 + $0x298] sm:$0xff]  ;;  %v346_v18 = vld [vmem:[#allocation18 + $0x288] sm:$0xff]  ;;  %v3337_v20 = vpack.c.bf16 %v343_v9, %v339_v7 }
  0xdd   :  { %2323 = vmatprep.subr.bf16.mxu1 %v2322_v30  ;;  %v341_v14 = vld [vmem:[#allocation18 + $0x260] sm:$0xff]  ;;  %v352_v17 = vld [vmem:[#allocation18 + $0x2b8] sm:$0xff]  ;;  %v350_v19 = vld [vmem:[#allocation18 + $0x2a8] sm:$0xff] }
  0xde   :  { %v2336_v22 = vpack.c.bf16 %v341_v14, %v337_v12  ;;  %v3340_v24 = vpack.c.bf16 %v352_v17, %v348_v15  ;;  %v347_v26 = vld [vmem:[#allocation18 + $0x290] sm:$0xff]  ;;  %v345_v28 = vld [vmem:[#allocation18 + $0x280] sm:$0xff]  ;;  %v2338_v30 = vpack.c.bf16 %v350_v19, %v346_v18  ;;  %v356_v32 = vld [vmem:[#allocation18 + $0x2d8] sm:$0xff] }
  0xdf   :  { %2389 = vmatpush1.bf16.msra.mxu0 %v3319_v37  ;;  %v351_v27 = vld [vmem:[#allocation18 + $0x2b0] sm:$0xff]  ;;  %v349_v31 = vld [vmem:[#allocation18 + $0x2a0] sm:$0xff]  ;;  %v360_v33 = vld [vmem:[#allocation18 + $0x2f8] sm:$0xff] }
  0xe0   :  { %2325 = vmatpush1.bf16.msra.mxu1 %v2324_v38  ;;  %2391 = vmatprep.subr.bf16.mxu0 %v3322_v39  ;;  %v354_v35 = vld [vmem:[#allocation18 + $0x2c8] sm:$0xff]  ;;  %v3343_v38 = vpack.c.bf16 %v351_v27, %v347_v26  ;;  %v2340_v40 = vpack.c.bf16 %v349_v31, %v345_v28  ;;  %v3346_v41 = vpack.c.bf16 %v360_v33, %v356_v32  ;;  %v355_v43 = vld [vmem:[#allocation18 + $0x2d0] sm:$0xff]  ;;  %v353_v45 = vld [vmem:[#allocation18 + $0x2c0] sm:$0xff] }
  0xe1   :  { %2327 = vmatprep.subr.bf16.mxu1 %v2326_v44  ;;  %v358_v36 = vld [vmem:[#allocation18 + $0x2e8] sm:$0xff]  ;;  %v359_v44 = vld [vmem:[#allocation18 + $0x2f0] sm:$0xff]  ;;  %v357_v48 = vld [vmem:[#allocation18 + $0x2e0] sm:$0xff] }
  0xe2   :  { %v2342_v46 = vpack.c.bf16 %v358_v36, %v354_v35  ;;  %v364_v49 = vld [vmem:[#allocation18 + $0x318] sm:$0xff]  ;;  %v366_v54 = vld [vmem:[#allocation18 + $0x328] sm:$0xff]  ;;  %v3349_v55 = vpack.c.bf16 %v359_v44, %v355_v43  ;;  %v2344_v56 = vpack.c.bf16 %v357_v48, %v353_v45  ;;  %v363_v60 = vld [vmem:[#allocation18 + $0x310] sm:$0xff] }
  0xe3   :  { %2393 = vmatpush1.bf16.msra.mxu0 %v3325_v51  ;;  %v368_v50 = vld [vmem:[#allocation18 + $0x338] sm:$0xff]  ;;  %v367_v61 = vld [vmem:[#allocation18 + $0x330] sm:$0xff]  ;;  %v361_v62 = vld [vmem:[#allocation18 + $0x300] sm:$0xff] }
  0xe4   :  { %2329 = vmatpush1.bf16.msra.mxu1 %v2328_v52  ;;  %2395 = vmatprep.subr.bf16.mxu0 %v3328_v53  ;;  %v362_v52 = vld [vmem:[#allocation18 + $0x308] sm:$0xff]  ;;  %v365_v2 = vld [vmem:[#allocation18 + $0x320] sm:$0xff]  ;;  %v376_v7 = vld [vmem:[#allocation18 + $0x378] sm:$0xff] }
  0xe5   :  { %2331 = vmatprep.subr.bf16.mxu1 %v2330_v58  ;;  %v3352_v58 = vpack.c.bf16 %v368_v50, %v364_v49  ;;  %v2346_v63 = vpack.c.bf16 %v366_v54, %v362_v52  ;;  %v370_v9 = vld [vmem:[#allocation18 + $0x348] sm:$0xff]  ;;  %v2348_v14 = vpack.c.bf16 %v365_v2, %v361_v62  ;;  %v371_v17 = vld [vmem:[#allocation18 + $0x350] sm:$0xff]  ;;  %v369_v19 = vld [vmem:[#allocation18 + $0x340] sm:$0xff] }
  0xe6   :  { %v374_v12 = vld [vmem:[#allocation18 + $0x368] sm:$0xff]  ;;  %v375_v18 = vld [vmem:[#allocation18 + $0x370] sm:$0xff]  ;;  %v373_v26 = vld [vmem:[#allocation18 + $0x360] sm:$0xff] }
  0xe7   :  { %2397 = vmatpush1.bf16.msra.mxu0 %v3331_v4  ;;  %v380_v27 = vld [vmem:[#allocation18 + $0x398] sm:$0xff]  ;;  %v2352_v31 = vpack.c.bf16 %v373_v26, %v369_v19  ;;  %v378_v33 = vld [vmem:[#allocation18 + $0x388] sm:$0xff]  ;;  %v379_v36 = vld [vmem:[#allocation18 + $0x390] sm:$0xff] }
  0xe8   :  { %2333 = vmatpush1.bf16.msra.mxu1 %v2332_v5  ;;  %2399 = vmatprep.subr.bf16.mxu0 %v3334_v6  ;;  %v372_v5 = vld [vmem:[#allocation18 + $0x358] sm:$0xff]  ;;  %v382_v35 = vld [vmem:[#allocation18 + $0x3a8] sm:$0xff]  ;;  %v383_v43 = vld [vmem:[#allocation18 + $0x3b0] sm:$0xff] }
  0xe9   :  { %2335 = vmatprep.subr.bf16.mxu1 %v2334_v13  ;;  %v3355_v13 = vpack.c.bf16 %v367_v61, %v363_v60  ;;  %v3358_v15 = vpack.c.bf16 %v376_v7, %v372_v5  ;;  %v384_v28 = vld [vmem:[#allocation18 + $0x3b8] sm:$0xff]  ;;  %v377_v44 = vld [vmem:[#allocation18 + $0x380] sm:$0xff]  ;;  %v386_v54 = vld [vmem:[#allocation18 + $0x3c8] sm:$0xff] }
  0xea   :  { %v3364_v32 = vpack.c.bf16 %v384_v28, %v380_v27  ;;  %v381_v45 = vld [vmem:[#allocation18 + $0x3a0] sm:$0xff]  ;;  %v388_v49 = vld [vmem:[#allocation18 + $0x3d8] sm:$0xff]  ;;  %v387_v60 = vld [vmem:[#allocation18 + $0x3d0] sm:$0xff] }
  0xeb   :  { %2401 = vmatpush1.bf16.msra.mxu0 %v3337_v20  ;;  %v2356_v48 = vpack.c.bf16 %v381_v45, %v377_v44  ;;  %v392_v50 = vld [vmem:[#allocation18 + $0x3f8] sm:$0xff]  ;;  %v391_v62 = vld [vmem:[#allocation18 + $0x3f0] sm:$0xff]  ;;  %v389_v2 = vld [vmem:[#allocation18 + $0x3e0] sm:$0xff] }
  0xec   :  { %2337 = vmatpush1.bf16.msra.mxu1 %v2336_v22  ;;  %2403 = vmatprep.subr.bf16.mxu0 %v3340_v24  ;;  %v2350_v22 = vpack.c.bf16 %v374_v12, %v370_v9  ;;  %v3371_v52 = vpack.c.bf16 %v392_v50, %v388_v49  ;;  %v2424_v5 = vpack.c.bf16 %v391_v62, %v387_v60  ;;  %v1450_v44 = vld [vmem:[#allocation19 + $0x190] sm:$0xff]  ;;  %v1491_v60 = vld [vmem:[#allocation19 + $0x2d8] sm:$0xff] }
  0xed   :  { %2339 = vmatprep.subr.bf16.mxu1 %v2338_v30  ;;  %v3361_v30 = vpack.c.bf16 %v375_v18, %v371_v17  ;;  %v1458_v45 = vld [vmem:[#allocation19 + $0x1d0] sm:$0xff] }
  0xee   :  { %v2568_v49 = vpack.c.bf16 %v1458_v45, %v1450_v44  ;;  %v1610_v45 = vld [vmem:[#allocation19 + $0x690] sm:$0xff] }
  0xef   :  { %2405 = vmatpush1.bf16.msra.mxu0 %v3343_v38 }
  0xf0   :  { %2341 = vmatpush1.bf16.msra.mxu1 %v2340_v40  ;;  %2407 = vmatprep.subr.bf16.mxu0 %v3346_v41  ;;  %v2354_v40 = vpack.c.bf16 %v382_v35, %v378_v33  ;;  %v1442_v33 = vld [vmem:[#allocation19 + $0x150] sm:$0xff]  ;;  %v1451_v35 = vld [vmem:[#allocation19 + $0x198] sm:$0xff] }
  0xf1   :  { %2343 = vmatprep.subr.bf16.mxu1 %v2342_v46  ;;  %v3368_v46 = vpack.c.bf16 %v383_v43, %v379_v36 }
  0xf3   :  { %2409 = vmatpush1.bf16.msra.mxu0 %v3349_v55 }
  0xf4   :  { %2345 = vmatpush1.bf16.msra.mxu1 %v2344_v56  ;;  %2411 = vmatprep.subr.bf16.mxu0 %v3352_v58  ;;  %v390_v56 = vld [vmem:[#allocation18 + $0x3e8] sm:$0xff] }
  0xf5   :  { %2347 = vmatprep.subr.bf16.mxu1 %v2346_v63  ;;  %v2358_v61 = vpack.c.bf16 %v390_v56, %v386_v54  ;;  %v385_v63 = vld [vmem:[#allocation18 + $0x3c0] sm:$0xff]  ;;  %v1474_v54 = vld [vmem:[#allocation19 + $0x250] sm:$0xff]  ;;  %v1483_v56 = vld [vmem:[#allocation19 + $0x298] sm:$0xff] }
  0xf6   :  { %v2360_v7 = vpack.c.bf16 %v389_v2, %v385_v63  ;;  %v2574_v62 = vpack.c.bf16 %v1491_v60, %v1483_v56  ;;  %v1482_v63 = vld [vmem:[#allocation19 + $0x290] sm:$0xff] }
  0xf7   :  { %2413 = vmatpush1.bf16.msra.mxu0 %v3355_v13  ;;  %v1490_v2 = vld [vmem:[#allocation19 + $0x2d0] sm:$0xff] }
  0xf8   :  { %2349 = vmatpush1.bf16.msra.mxu1 %v2348_v14  ;;  %2415 = vmatprep.subr.bf16.mxu0 %v3358_v15  ;;  %v260_v14 = vstv %s172_s10  ;;  %v1634_v56 = vld [vmem:[#allocation19 + $0x750] sm:$0xff] }
  0xf9   :  { %2351 = vmatprep.subr.bf16.mxu1 %v2350_v22 }
  0xfb   :  { %2417 = vmatpush1.bf16.msra.mxu0 %v3361_v30 }
  0xfc   :  { %2353 = vmatpush1.bf16.msra.mxu1 %v2352_v31  ;;  %2419 = vmatprep.subr.bf16.mxu0 %v3364_v32 }
  0xfd   :  { %2355 = vmatprep.subr.bf16.mxu1 %v2354_v40  ;;  %v1459_v40 = vld [vmem:[#allocation19 + $0x1d8] sm:$0xff] }
  0xfe   :  { %v2566_v43 = vpack.c.bf16 %v1459_v40, %v1451_v35  ;;  %v1602_v35 = vld [vmem:[#allocation19 + $0x650] sm:$0xff]  ;;  %v1619_v40 = vld [vmem:[#allocation19 + $0x6d8] sm:$0xff] }
  0xff   :  { %2421 = vmatpush1.bf16.msra.mxu0 %v3368_v46 }
 0x100   :  { %2357 = vmatpush1.bf16.msra.mxu1 %v2356_v48  ;;  %2423 = vmatprep.subr.bf16.mxu0 %v3371_v52  ;;  %v1475_v48 = vld [vmem:[#allocation19 + $0x258] sm:$0xff] }
 0x101   :  { %2359 = vmatprep.subr.bf16.mxu1 %v2358_v61 }
 0x103   :  { %2425 = vmatpush1.bf16.msra.mxu0 %v2424_v5 }
 0x104   :  { %2361 = vmatpush1.bf16.msra.mxu1 %v2360_v7  ;;  %v1507_v7 = vld [vmem:[#allocation19 + $0x358] sm:$0xff] }
 0x105   :  { %2427 = vmatprep.subr.bf16.mxu1 %v3281_v11  ;;  %v610_v11 = vld [vmem:[#allocation10 + $0x20] sm:$0xff] }
 0x142   :  { %v181_v9 = vpop.permute.xlu0 %180 }
 0x196   :  { %v253_v12 = vpop.f32.mrb[0].mxu0 }
 0x197   :  { %v254_v17 = vadd.f32 %v253_v12, %v181_v9  ;;  %v255_v18 = vpop.f32.mrb[1].mxu0 }
 0x198   :  { %v256_v19 = vadd.f32 %v255_v18, %v181_v9  ;;  %v2576_v9 = vpack.c.bf16 %v1490_v2, %v1482_v63  ;;  %v1515_v18 = vld [vmem:[#allocation19 + $0x398] sm:$0xff] }
 0x199   :  { %v261_v22 = vmul.f32 %v260_v14, %v254_v17  ;;  %vm258_vm1 = vcmp.ge.f32.partialorder %v254_v17, 0.0 }
 0x19a   :  { %vm259_vm2 = vcmp.ge.f32.partialorder %v256_v19, 0.0  ;;  %v262_v26 = vmul.f32 %v260_v14, %v256_v19  ;;  %v1498_v14 = vld [vmem:[#allocation19 + $0x310] sm:$0xff] }
 0x19b   :  { %v3377_v28 = vsel %vm258_vm1, %v254_v17, %v261_v22  ;;  %v1506_v17 = vld [vmem:[#allocation19 + $0x350] sm:$0xff] }
 0x19c   :  { %v3375_v27 = vsel %vm259_vm2, %v256_v19, %v262_v26  ;;  %v1523_v19 = vld [vmem:[#allocation19 + $0x3d8] sm:$0xff]  ;;  %v2580_v22 = vpack.c.bf16 %v1506_v17, %v1498_v14  ;;  %v1417_v14 = vld [vmem:[#allocation19 + $0x88] sm:$0xff] }
 0x19d   :  { %457 = vmatprep.mubr.f32.mxu1 %v3375_v27  ;;  %528 = vmatprep.mubr.f32.mxu0 %v3375_v27  ;;  %v2582_v26 = vpack.c.bf16 %v1523_v19, %v1515_v18  ;;  %v1425_v17 = vld [vmem:[#allocation19 + $0xc8] sm:$0xff]  ;;  %v1325_v18 = vld [vmem:[#allocation15] sm:$0xf] }
 0x19e   :  { %618 = vmatprep.subr.mxu0 %v3375_v27  ;;  %458 = vmatmul.mubr.f32.vlgmr.msra.gmra.mrb[0].mxu1 %v3377_v28 }
 0x19f   :  { %529 = vmatmul.mubr.f32.vlgmr.msra.gmra.mrb[2].mxu0 %v3377_v28  ;;  %2429 = vmatpush1.bf16.msra.mxu1 %v3283_v16 }
 0x1a0   :  { %619 = vmatpush1.msra.mxu0 %v3377_v28  ;;  %682 = vmatprep.mubr.f32.mxu0 %v3071_v3 }
 0x1a1   :  { %2431 = vmatprep.subr.bf16.mxu1 %v3286_v21 }
 0x1a3   :  { %2284 = vmatmul.mubr.msk.f32.vlgmr.msra.gmra.mrb[4].mxu0 %vm183_vm0, %v610_v11  ;;  %2433 = vmatpush1.bf16.msra.mxu1 %v3289_v29  ;;  %v1531_v11 = vld [vmem:[#allocation19 + $0x418] sm:$0xff] }
 0x1a4   :  { %2435 = vmatprep.subr.bf16.mxu1 %v3292_v34  ;;  %756 = vmatprep.mubr.f32.mxu0 %v3071_v3  ;;  %v609_v34 = vld [vmem:[#allocation10 + $0x18] sm:$0xff] }
 0x1a7   :  { %2437 = vmatpush1.bf16.msra.mxu1 %v3295_v42 }
 0x1a8   :  { %2439 = vmatprep.subr.bf16.mxu1 %v3298_v47 }
 0x1ab   :  { %2441 = vmatpush1.bf16.msra.mxu1 %v3301_v57 }
 0x1ac   :  { %2443 = vmatprep.subr.bf16.mxu1 %v3304_v59  ;;  %v611_v59 = vld [vmem:[#allocation10 + $0x28] sm:$0xff] }
 0x1af   :  { %2445 = vmatpush1.bf16.msra.mxu1 %v3307_v8  ;;  %v607_v8 = vld [vmem:[#allocation10 + $0x8] sm:$0xff] }
 0x1b0   :  { %2447 = vmatprep.subr.bf16.mxu1 %v3310_v10  ;;  %v613_v10 = vld [vmem:[#allocation10 + $0x38] sm:$0xff] }
 0x1b3   :  { %2449 = vmatpush1.bf16.msra.mxu1 %v3313_v23  ;;  %v612_v23 = vld [vmem:[#allocation10 + $0x30] sm:$0xff] }
 0x1b4   :  { %2451 = vmatprep.subr.bf16.mxu1 %v3316_v25  ;;  %v614_v25 = vld [vmem:[#allocation10 + $0x40] sm:$0xff] }
 0x1b7   :  { %2453 = vmatpush1.bf16.msra.mxu1 %v3319_v37  ;;  %v608_v37 = vld [vmem:[#allocation10 + $0x10] sm:$0xff] }
 0x1b8   :  { %2455 = vmatprep.subr.bf16.mxu1 %v3322_v39  ;;  %v1403_v39 = vld [vmem:[#allocation19 + $0x18] sm:$0xff] }
 0x1bb   :  { %2457 = vmatpush1.bf16.msra.mxu1 %v3325_v51  ;;  %v1411_v51 = vld [vmem:[#allocation19 + $0x58] sm:$0xff] }
 0x1bc   :  { %2459 = vmatprep.subr.bf16.mxu1 %v3328_v53  ;;  %v2554_v53 = vpack.c.bf16 %v1411_v51, %v1403_v39  ;;  %v1563_v39 = vld [vmem:[#allocation19 + $0x518] sm:$0xff] }
 0x1bd   :  { %v1571_v51 = vld [vmem:[#allocation19 + $0x558] sm:$0xff] }
 0x1bf   :  { %2461 = vmatpush1.bf16.msra.mxu1 %v3331_v4  ;;  %v1402_v4 = vld [vmem:[#allocation19 + $0x10] sm:$0xff] }
 0x1c0   :  { %2463 = vmatprep.subr.bf16.mxu1 %v3334_v6  ;;  %v1410_v6 = vld [vmem:[#allocation19 + $0x50] sm:$0xff] }
 0x1c3   :  { %2465 = vmatpush1.bf16.msra.mxu1 %v3337_v20  ;;  %v2556_v20 = vpack.c.bf16 %v1410_v6, %v1402_v4  ;;  %v2594_v4 = vpack.c.bf16 %v1571_v51, %v1563_v39  ;;  %v1562_v6 = vld [vmem:[#allocation19 + $0x510] sm:$0xff]  ;;  %v1473_v39 = vld [vmem:[#allocation19 + $0x248] sm:$0xff] }
 0x1c4   :  { %2467 = vmatprep.subr.bf16.mxu1 %v3340_v24  ;;  %v1419_v24 = vld [vmem:[#allocation19 + $0x98] sm:$0xff] }
 0x1c7   :  { %2469 = vmatpush1.bf16.msra.mxu1 %v3343_v38  ;;  %v1427_v38 = vld [vmem:[#allocation19 + $0xd8] sm:$0xff] }
 0x1c8   :  { %2471 = vmatprep.subr.bf16.mxu1 %v3346_v41  ;;  %v2558_v41 = vpack.c.bf16 %v1427_v38, %v1419_v24  ;;  %v1579_v24 = vld [vmem:[#allocation19 + $0x598] sm:$0xff] }
 0x1c9   :  { %v1587_v38 = vld [vmem:[#allocation19 + $0x5d8] sm:$0xff] }
 0x1cb   :  { %2473 = vmatpush1.bf16.msra.mxu1 %v3349_v55  ;;  %v1418_v55 = vld [vmem:[#allocation19 + $0x90] sm:$0xff] }
 0x1cc   :  { %2475 = vmatprep.subr.bf16.mxu1 %v3352_v58  ;;  %v1426_v58 = vld [vmem:[#allocation19 + $0xd0] sm:$0xff] }
 0x1cf   :  { %2477 = vmatpush1.bf16.msra.mxu1 %v3355_v13  ;;  %v2560_v13 = vpack.c.bf16 %v1426_v58, %v1418_v55  ;;  %v2598_v55 = vpack.c.bf16 %v1587_v38, %v1579_v24  ;;  %v1578_v58 = vld [vmem:[#allocation19 + $0x590] sm:$0xff]  ;;  %v1489_v24 = vld [vmem:[#allocation19 + $0x2c8] sm:$0xff] }
 0x1d0   :  { %2479 = vmatprep.subr.bf16.mxu1 %v3358_v15  ;;  %v1435_v15 = vld [vmem:[#allocation19 + $0x118] sm:$0xff] }
 0x1d3   :  { %2481 = vmatpush1.bf16.msra.mxu1 %v3361_v30  ;;  %v1443_v30 = vld [vmem:[#allocation19 + $0x158] sm:$0xff] }
 0x1d4   :  { %2483 = vmatprep.subr.bf16.mxu1 %v3364_v32  ;;  %v2562_v31 = vpack.c.bf16 %v1443_v30, %v1435_v15  ;;  %v1434_v32 = vld [vmem:[#allocation19 + $0x110] sm:$0xff]  ;;  %v1595_v15 = vld [vmem:[#allocation19 + $0x618] sm:$0xff] }
 0x1d5   :  { %v2564_v36 = vpack.c.bf16 %v1442_v33, %v1434_v32  ;;  %v1603_v30 = vld [vmem:[#allocation19 + $0x658] sm:$0xff]  ;;  %v1594_v33 = vld [vmem:[#allocation19 + $0x610] sm:$0xff] }
 0x1d6   :  { %v2602_v32 = vpack.c.bf16 %v1603_v30, %v1595_v15  ;;  %v1488_v15 = vld [vmem:[#allocation19 + $0x2c0] sm:$0xff]  ;;  %v1497_v30 = vld [vmem:[#allocation19 + $0x308] sm:$0xff] }
 0x1d7   :  { %2485 = vmatpush1.bf16.msra.mxu1 %v3368_v46  ;;  %v1467_v46 = vld [vmem:[#allocation19 + $0x218] sm:$0xff] }
 0x1d8   :  { %2487 = vmatprep.subr.bf16.mxu1 %v3371_v52  ;;  %v2570_v50 = vpack.c.bf16 %v1475_v48, %v1467_v46  ;;  %v1466_v52 = vld [vmem:[#allocation19 + $0x210] sm:$0xff]  ;;  %v1627_v48 = vld [vmem:[#allocation19 + $0x718] sm:$0xff] }
 0x1d9   :  { %v2572_v61 = vpack.c.bf16 %v1474_v54, %v1466_v52  ;;  %v1618_v46 = vld [vmem:[#allocation19 + $0x6d0] sm:$0xff] }
 0x1da   :  { %v1626_v54 = vld [vmem:[#allocation19 + $0x710] sm:$0xff] }
 0x1db   :  { %2489 = vmatpush1.bf16.msra.mxu1 %v2424_v5  ;;  %v1499_v5 = vld [vmem:[#allocation19 + $0x318] sm:$0xff]  ;;  %v2612_v60 = vpack.c.bf16 %v1634_v56, %v1626_v54  ;;  %v1528_v56 = vld [vmem:[#allocation19 + $0x400] sm:$0xff] }
 0x1dc   :  { %2555 = vmatprep.subr.bf16.mxu1 %v2554_v53  ;;  %v2578_v12 = vpack.c.bf16 %v1507_v7, %v1499_v5  ;;  %v606_v5 = vld [vmem:[#allocation10] sm:$0xff] }
 0x271   :  { %v459_v16 = vpop.f32.mrb[0].mxu1 }
 0x272   :  { %v530_v21 = vpop.f32.mrb[2].mxu0  ;;  %v461_v29 = vpop.f32.mrb[1].mxu1 }
 0x273   :  { %v532_v42 = vpop.f32.mrb[3].mxu0  ;;  %599 = vmatprep.mubr.f32.mxu1 %v461_v29  ;;  %692 = vmatprep.subr.mxu0 %v461_v29 }
 0x274   :  { %600 = vmatmul.mubr.f32.vlgmr.msra.gmra.mrb[2].mxu1 %v459_v16  ;;  %693 = vmatpush1.msra.mxu0 %v459_v16 }
 0x275   :  { %2285 = vmatmul.mubr.msk.f32.vlgmr.msra.gmra.mrb[6].mxu0 %vm183_vm0, %v609_v34  ;;  %766 = vmatprep.subr.mxu0 %v3375_v27  ;;  %v1530_v34 = vld [vmem:[#allocation19 + $0x410] sm:$0xff] }
 0x276   :  { %v3420_v47 = vpop.f32.mrb[4].mxu0  ;;  %767 = vmatpush1.msra.mxu0 %v3377_v28  ;;  %830 = vmatprep.mubr.f32.mxu0 %v3071_v3 }
 0x277   :  { %v3424_v57 = vpop.f32.mrb[5].mxu0  ;;  %840 = vmatprep.subr.mxu0 %v532_v42  ;;  %2557 = vmatpush1.bf16.msra.mxu1 %v2556_v20  ;;  %v1570_v20 = vld [vmem:[#allocation19 + $0x550] sm:$0xff] }
 0x278   :  { %2559 = vmatprep.subr.bf16.mxu1 %v2558_v41  ;;  %v2596_v41 = vpack.c.bf16 %v1570_v20, %v1562_v6  ;;  %v1472_v6 = vld [vmem:[#allocation19 + $0x240] sm:$0xff]  ;;  %v1481_v20 = vld [vmem:[#allocation19 + $0x288] sm:$0xff] }
 0x27b   :  { %2561 = vmatpush1.bf16.msra.mxu1 %v2560_v13  ;;  %v1586_v13 = vld [vmem:[#allocation19 + $0x5d0] sm:$0xff] }
 0x27c   :  { %2563 = vmatprep.subr.bf16.mxu1 %v2562_v31  ;;  %v2600_v31 = vpack.c.bf16 %v1586_v13, %v1578_v58  ;;  %v2510_v58 = vpack.c.bf16 %v1489_v24, %v1481_v20  ;;  %v1480_v13 = vld [vmem:[#allocation19 + $0x280] sm:$0xff] }
 0x27d   :  { %2286 = vmatmul.mubr.msk.f32.vlgmr.msra.gmra.mrb[6].mxu0 %vm183_vm0, %v611_v59  ;;  %v1547_v59 = vld [vmem:[#allocation19 + $0x498] sm:$0xff]  ;;  %v1624_v24 = vld [vmem:[#allocation19 + $0x700] sm:$0xff] }
 0x27e   :  { %841 = vmatpush1.msra.mxu0 %v530_v21  ;;  %904 = vmatprep.mubr.f32.mxu0 %v3071_v3 }
 0x27f   :  { %914 = vmatprep.subr.mxu0 %v3375_v27  ;;  %2565 = vmatpush1.bf16.msra.mxu1 %v2564_v36  ;;  %v1611_v36 = vld [vmem:[#allocation19 + $0x698] sm:$0xff] }
 0x280   :  { %2567 = vmatprep.subr.bf16.mxu1 %v2566_v43  ;;  %v2604_v43 = vpack.c.bf16 %v1602_v35, %v1594_v33  ;;  %v2606_v44 = vpack.c.bf16 %v1619_v40, %v1611_v36  ;;  %v1496_v35 = vld [vmem:[#allocation19 + $0x300] sm:$0xff]  ;;  %v1513_v40 = vld [vmem:[#allocation19 + $0x388] sm:$0xff] }
 0x281   :  { %2287 = vmatmul.mubr.msk.f32.vlgmr.msra.gmra.mrb[8].mxu0 %vm183_vm0, %v607_v8  ;;  %v1555_v8 = vld [vmem:[#allocation19 + $0x4d8] sm:$0xff]  ;;  %v1504_v36 = vld [vmem:[#allocation19 + $0x340] sm:$0xff] }
 0x282   :  { %915 = vmatpush1.msra.mxu0 %v3377_v28  ;;  %978 = vmatprep.mubr.f32.mxu0 %v3071_v3 }
 0x283   :  { %988 = vmatprep.subr.mxu0 %v461_v29  ;;  %2569 = vmatpush1.bf16.msra.mxu1 %v2568_v49  ;;  %v1635_v49 = vld [vmem:[#allocation19 + $0x758] sm:$0xff] }
 0x284   :  { %2571 = vmatprep.subr.bf16.mxu1 %v2570_v50  ;;  %v2608_v50 = vpack.c.bf16 %v1618_v46, %v1610_v45  ;;  %v2610_v52 = vpack.c.bf16 %v1635_v49, %v1627_v48  ;;  %v1512_v46 = vld [vmem:[#allocation19 + $0x380] sm:$0xff]  ;;  %v1529_v49 = vld [vmem:[#allocation19 + $0x408] sm:$0xff] }
 0x285   :  { %v1520_v48 = vld [vmem:[#allocation19 + $0x3c0] sm:$0xff] }
 0x287   :  { %2573 = vmatpush1.bf16.msra.mxu1 %v2572_v61  ;;  %v1401_v61 = vld [vmem:[#allocation19 + $0x8] sm:$0xff] }
 0x288   :  { %2575 = vmatprep.subr.bf16.mxu1 %v2574_v62  ;;  %v1409_v62 = vld [vmem:[#allocation19 + $0x48] sm:$0xff] }
 0x289   :  { %2288 = vmatmul.mubr.msk.f32.vlgmr.msra.gmra.mrb[8].mxu0 %vm183_vm0, %v613_v10  ;;  %v2490_v7 = vpack.c.bf16 %v1409_v62, %v1401_v61  ;;  %v1545_v61 = vld [vmem:[#allocation19 + $0x488] sm:$0xff] }
 0x28a   :  { %989 = vmatpush1.msra.mxu0 %v459_v16  ;;  %1052 = vmatprep.mubr.f32.mxu0 %v3071_v3  ;;  %v1539_v16 = vld [vmem:[#allocation19 + $0x458] sm:$0xff]  ;;  %v1553_v62 = vld [vmem:[#allocation19 + $0x4c8] sm:$0xff] }
 0x28b   :  { %1062 = vmatprep.subr.mxu0 %v3375_v27  ;;  %2577 = vmatpush1.bf16.msra.mxu1 %v2576_v9  ;;  %v1514_v27 = vld [vmem:[#allocation19 + $0x390] sm:$0xff]  ;;  %v2586_v29 = vpack.c.bf16 %v1539_v16, %v1531_v11  ;;  %v1400_v9 = vld [vmem:[#allocation19] sm:$0xff]  ;;  %v1441_v11 = vld [vmem:[#allocation19 + $0x148] sm:$0xff] }
 0x28c   :  { %2579 = vmatprep.subr.bf16.mxu1 %v2578_v12  ;;  %v1408_v12 = vld [vmem:[#allocation19 + $0x40] sm:$0xff] }
 0x28d   :  { %2289 = vmatmul.mubr.msk.f32.vlgmr.msra.gmra.mrb[10].mxu0 %vm183_vm0, %v612_v23  ;;  %v2590_v23 = vpack.c.bf16 %v1555_v8, %v1547_v59  ;;  %v2492_v19 = vpack.c.bf16 %v1408_v12, %v1400_v9  ;;  %v1457_v59 = vld [vmem:[#allocation19 + $0x1c8] sm:$0xff] }
 0x28e   :  { %1063 = vmatpush1.msra.mxu0 %v3377_v28  ;;  %1126 = vmatprep.mubr.f32.mxu0 %v3071_v3  ;;  %v1522_v28 = vld [vmem:[#allocation19 + $0x3d0] sm:$0xff]  ;;  %v1561_v9 = vld [vmem:[#allocation19 + $0x508] sm:$0xff] }
 0x28f   :  { %1136 = vmatprep.subr.mxu0 %v532_v42  ;;  %2581 = vmatpush1.bf16.msra.mxu1 %v2580_v22  ;;  %v1538_v42 = vld [vmem:[#allocation19 + $0x450] sm:$0xff]  ;;  %v2494_v22 = vpack.c.bf16 %v1425_v17, %v1417_v14  ;;  %v1569_v12 = vld [vmem:[#allocation19 + $0x548] sm:$0xff] }
 0x290   :  { %2583 = vmatprep.subr.bf16.mxu1 %v2582_v26  ;;  %v2588_v10 = vpack.c.bf16 %v1538_v42, %v1530_v34  ;;  %v1416_v26 = vld [vmem:[#allocation19 + $0x80] sm:$0xff]  ;;  %v1449_v42 = vld [vmem:[#allocation19 + $0x188] sm:$0xff]  ;;  %v2530_v17 = vpack.c.bf16 %v1569_v12, %v1561_v9  ;;  %v1423_v12 = vld [vmem:[#allocation19 + $0xb8] sm:$0xff] }
 0x291   :  { %v1440_v34 = vld [vmem:[#allocation19 + $0x140] sm:$0xff]  ;;  %v1429_v9 = vld [vmem:[#allocation19 + $0xe8] sm:$0xff] }
 0x295   :  { %2290 = vmatmul.mubr.msk.f32.vlgmr.msra.gmra.mrb[10].mxu0 %vm183_vm0, %v614_v25  ;;  %v1546_v25 = vld [vmem:[#allocation19 + $0x490] sm:$0xff] }
 0x296   :  { %1137 = vmatpush1.msra.mxu0 %v530_v21  ;;  %1200 = vmatprep.mubr.f32.mxu0 %v3071_v3  ;;  %v2584_v21 = vpack.c.bf16 %v1522_v28, %v1514_v27  ;;  %v1424_v27 = vld [vmem:[#allocation19 + $0xc0] sm:$0xff]  ;;  %v1433_v28 = vld [vmem:[#allocation19 + $0x108] sm:$0xff] }
 0x298   :  { %2585 = vmatpush1.bf16.msra.mxu1 %v2584_v21  ;;  %v2496_v21 = vpack.c.bf16 %v1424_v27, %v1416_v26  ;;  %v1585_v26 = vld [vmem:[#allocation19 + $0x5c8] sm:$0xff] }
 0x299   :  { %2587 = vmatprep.subr.bf16.mxu1 %v2586_v29 }
 0x29c   :  { %2589 = vmatpush1.bf16.msra.mxu1 %v2588_v10  ;;  %v2502_v10 = vpack.c.bf16 %v1457_v59, %v1449_v42  ;;  %v1592_v59 = vld [vmem:[#allocation19 + $0x600] sm:$0xff] }
 0x29d   :  { %2291 = vmatmul.mubr.msk.f32.vlgmr.msra.gmra.mrb[10].mxu0 %vm183_vm0, %v608_v37  ;;  %v1554_v37 = vld [vmem:[#allocation19 + $0x4d0] sm:$0xff]  ;;  %2591 = vmatprep.subr.bf16.mxu1 %v2590_v23  ;;  %v1448_v23 = vld [vmem:[#allocation19 + $0x180] sm:$0xff] }
 0x29e   :  { %1276 = vmatprep.mubr.f32.mxu0 %v3071_v3  ;;  %v2592_v53 = vpack.c.bf16 %v1554_v37, %v1546_v25  ;;  %v1456_v25 = vld [vmem:[#allocation19 + $0x1c0] sm:$0xff]  ;;  %v1465_v37 = vld [vmem:[#allocation19 + $0x208] sm:$0xff] }
 0x29f   :  { %v2504_v51 = vpack.c.bf16 %v1456_v25, %v1448_v23  ;;  %v1617_v23 = vld [vmem:[#allocation19 + $0x6c8] sm:$0xff] }
 0x2a0   :  { %2593 = vmatpush1.bf16.msra.mxu1 %v2592_v53  ;;  %v2506_v53 = vpack.c.bf16 %v1473_v39, %v1465_v37  ;;  %v1608_v39 = vld [vmem:[#allocation19 + $0x680] sm:$0xff] }
 0x2a1   :  { %2595 = vmatprep.subr.bf16.mxu1 %v2594_v4  ;;  %v1464_v4 = vld [vmem:[#allocation19 + $0x200] sm:$0xff] }
 0x2a4   :  { %2597 = vmatpush1.bf16.msra.mxu1 %v2596_v41  ;;  %v2508_v41 = vpack.c.bf16 %v1472_v6, %v1464_v4  ;;  %v1633_v4 = vld [vmem:[#allocation19 + $0x748] sm:$0xff] }
 0x2a5   :  { %2599 = vmatprep.subr.bf16.mxu1 %v2598_v55 }
 0x2a8   :  { %2601 = vmatpush1.bf16.msra.mxu1 %v2600_v31  ;;  %v1505_v31 = vld [vmem:[#allocation19 + $0x348] sm:$0xff] }
 0x2a9   :  { %2603 = vmatprep.subr.bf16.mxu1 %v2602_v32  ;;  %v2512_v32 = vpack.c.bf16 %v1488_v15, %v1480_v13  ;;  %v2514_v33 = vpack.c.bf16 %v1505_v31, %v1497_v30  ;;  %v1641_v13 = vld [vmem:[#allocation19 + $0x788] sm:$0xff]  ;;  %v1643_v30 = vld [vmem:[#allocation19 + $0x798] sm:$0xff] }
 0x2aa   :  { %v1649_v15 = vld [vmem:[#allocation19 + $0x7c8] sm:$0xff] }
 0x2ab   :  { %v2550_v31 = vpack.c.bf16 %v1649_v15, %v1641_v13  ;;  %v1452_v13 = vld [vmem:[#allocation19 + $0x1a0] sm:$0xff] }
 0x2ac   :  { %2605 = vmatpush1.bf16.msra.mxu1 %v2604_v43  ;;  %v1521_v43 = vld [vmem:[#allocation19 + $0x3c8] sm:$0xff]  ;;  %v1460_v15 = vld [vmem:[#allocation19 + $0x1e0] sm:$0xff] }
 0x2ad   :  { %2607 = vmatprep.subr.bf16.mxu1 %v2606_v44  ;;  %v2516_v44 = vpack.c.bf16 %v1504_v36, %v1496_v35  ;;  %v2518_v45 = vpack.c.bf16 %v1521_v43, %v1513_v40  ;;  %v1648_v35 = vld [vmem:[#allocation19 + $0x7c0] sm:$0xff]  ;;  %v1642_v43 = vld [vmem:[#allocation19 + $0x790] sm:$0xff] }
 0x2b0   :  { %2609 = vmatpush1.bf16.msra.mxu1 %v2608_v50  ;;  %v1537_v50 = vld [vmem:[#allocation19 + $0x448] sm:$0xff] }
 0x2b1   :  { %2611 = vmatprep.subr.bf16.mxu1 %v2610_v52  ;;  %v2520_v52 = vpack.c.bf16 %v1520_v48, %v1512_v46  ;;  %v2522_v54 = vpack.c.bf16 %v1537_v50, %v1529_v49  ;;  %v1405_v46 = vld [vmem:[#allocation19 + $0x28] sm:$0xff]  ;;  %v1407_v49 = vld [vmem:[#allocation19 + $0x38] sm:$0xff] }
 0x2b2   :  { %v1413_v48 = vld [vmem:[#allocation19 + $0x68] sm:$0xff] }
 0x2b3   :  { %v2618_v50 = vpack.c.bf16 %v1413_v48, %v1405_v46  ;;  %v1468_v46 = vld [vmem:[#allocation19 + $0x220] sm:$0xff] }
 0x2b4   :  { %2613 = vmatpush1.bf16.msra.mxu1 %v2612_v60  ;;  %v1536_v60 = vld [vmem:[#allocation19 + $0x440] sm:$0xff] }
 0x2b5   :  { %v1476_v48 = vld [vmem:[#allocation19 + $0x260] sm:$0xff] }
 0x347   :  { %v601_v63 = vpop.f32.mrb[2].mxu1 }
 0x348   :  { %v603_v2 = vpop.f32.mrb[3].mxu1 }
 0x349   :  { %1212 = vmatprep.subr.mxu0 %v603_v2  ;;  %v2526_v2 = vpack.c.bf16 %v1553_v62, %v1545_v61  ;;  %v1404_v61 = vld [vmem:[#allocation19 + $0x20] sm:$0xff] }
 0x34a   :  { %1213 = vmatpush1.msra.mxu0 %v601_v63  ;;  %v2524_v63 = vpack.c.bf16 %v1536_v60, %v1528_v56  ;;  %v2227_v56 = vld [vmem:[#allocation16] sm:$0xf]  ;;  %v1412_v62 = vld [vmem:[#allocation19 + $0x60] sm:$0xff] }
 0x34b   :  { %2292 = vmatmul.mubr.msk.f32.vlgmr.msra.gmra.mrb[10].mxu0 %vm183_vm0, %v606_v5  ;;  %1329 = vmatprep.subr.mxu0 %v3273_v0  ;;  %v2498_v0 = vpack.c.bf16 %v1441_v11, %v1433_v28  ;;  %v1544_v5 = vld [vmem:[#allocation19 + $0x480] sm:$0xff] }
 0x34c   :  { %1330 = vmatpush1.msra.mxu0 %v3275_v1  ;;  %1393 = vmatprep.mubr.f32.mxu0 %v3071_v3  ;;  %v1432_v1 = vld [vmem:[#allocation19 + $0x100] sm:$0xff] }
 0x34d   :  { %2491 = vmatprep.subr.bf16.mxu0 %v2490_v7  ;;  %v2500_v8 = vpack.c.bf16 %v1440_v34, %v1432_v1  ;;  %v1552_v7 = vld [vmem:[#allocation19 + $0x4c0] sm:$0xff]  ;;  %v1601_v1 = vld [vmem:[#allocation19 + $0x648] sm:$0xff]  ;;  %2230 = vperm.xlu1 %2785, %v2227_v56  }
 0x34e   :  { %v2528_v14 = vpack.c.bf16 %v1552_v7, %v1544_v5  ;;  %v1576_v11 = vld [vmem:[#allocation19 + $0x580] sm:$0xff]  ;;  %v1414_v5 = vld [vmem:[#allocation19 + $0x70] sm:$0xff]  ;;  %v1421_v7 = vld [vmem:[#allocation19 + $0xa8] sm:$0xff] }
 0x34f   :  { %2293 = vmatmul.mubr.msk.f32.vlgmr.msra.gmra.mrb[12].mxu0 %vm183_vm0, %v1325_v18  ;;  %v1560_v18 = vld [vmem:[#allocation19 + $0x500] sm:$0xff]  ;;  %v1485_v56 = vld [vmem:[#allocation19 + $0x2a8] sm:$0xff] }
 0x350   :  { %v3447_v16 = vpop.f32.mrb[6].mxu0  ;;  %2493 = vmatpush1.bf16.msra.mxu0 %v2492_v19  ;;  %v1568_v19 = vld [vmem:[#allocation19 + $0x540] sm:$0xff] }
 0x351   :  { %v3449_v29 = vpop.f32.mrb[7].mxu0  ;;  %2495 = vmatprep.subr.bf16.mxu0 %v2494_v22  ;;  %v1577_v22 = vld [vmem:[#allocation19 + $0x588] sm:$0xff]  ;;  %v2532_v27 = vpack.c.bf16 %v1568_v19, %v1560_v18  ;;  %v2620_v18 = vpack.c.bf16 %v1412_v62, %v1404_v61  ;;  %v1487_v62 = vld [vmem:[#allocation19 + $0x2b8] sm:$0xff] }
 0x352   :  { %v2534_v28 = vpack.c.bf16 %v1585_v26, %v1577_v22  ;;  %v1420_v22 = vld [vmem:[#allocation19 + $0xa0] sm:$0xff]  ;;  %v1493_v61 = vld [vmem:[#allocation19 + $0x2e8] sm:$0xff] }
 0x353   :  { %v1428_v26 = vld [vmem:[#allocation19 + $0xe0] sm:$0xff] }
 0x354   :  { %2497 = vmatpush1.bf16.msra.mxu0 %v2496_v21  ;;  %v1584_v21 = vld [vmem:[#allocation19 + $0x5c0] sm:$0xff] }
 0x355   :  { %2499 = vmatprep.subr.bf16.mxu0 %v2498_v0  ;;  %v1593_v0 = vld [vmem:[#allocation19 + $0x608] sm:$0xff]  ;;  %v2536_v34 = vpack.c.bf16 %v1584_v21, %v1576_v11  ;;  %v1422_v21 = vld [vmem:[#allocation19 + $0xb0] sm:$0xff] }
 0x356   :  { %v2538_v42 = vpack.c.bf16 %v1601_v1, %v1593_v0  ;;  %v1430_v0 = vld [vmem:[#allocation19 + $0xf0] sm:$0xff]  ;;  %v1437_v1 = vld [vmem:[#allocation19 + $0x128] sm:$0xff] }
 0x358   :  { %2501 = vmatpush1.bf16.msra.mxu0 %v2500_v8  ;;  %v1600_v8 = vld [vmem:[#allocation19 + $0x640] sm:$0xff] }
 0x359   :  { %2503 = vmatprep.subr.bf16.mxu0 %v2502_v10  ;;  %v1609_v10 = vld [vmem:[#allocation19 + $0x688] sm:$0xff]  ;;  %v2540_v25 = vpack.c.bf16 %v1600_v8, %v1592_v59  ;;  %v1447_v59 = vld [vmem:[#allocation19 + $0x178] sm:$0xff]  ;;  %v2624_v8 = vpack.c.bf16 %v1428_v26, %v1420_v22  ;;  %v1494_v22 = vld [vmem:[#allocation19 + $0x2f0] sm:$0xff] }
 0x35a   :  { %v2542_v37 = vpack.c.bf16 %v1617_v23, %v1609_v10  ;;  %v2688_v10 = vpack.c.bf16 %v1430_v0, %v1422_v21  ;;  %v1436_v23 = vld [vmem:[#allocation19 + $0x120] sm:$0xff]  ;;  %v1501_v26 = vld [vmem:[#allocation19 + $0x328] sm:$0xff] }
 0x35c   :  { %v3451_v38 = vpop.f32.mrb[8].mxu0  ;;  %2505 = vmatpush1.bf16.msra.mxu0 %v2504_v51  ;;  %v1616_v51 = vld [vmem:[#allocation19 + $0x6c0] sm:$0xff] }
 0x35d   :  { %v3453_v55 = vpop.f32.mrb[9].mxu0  ;;  %2507 = vmatprep.subr.bf16.mxu0 %v2506_v53  ;;  %v1625_v53 = vld [vmem:[#allocation19 + $0x708] sm:$0xff]  ;;  %v2544_v6 = vpack.c.bf16 %v1616_v51, %v1608_v39  ;;  %v1438_v51 = vld [vmem:[#allocation19 + $0x130] sm:$0xff] }
 0x35e   :  { %v2546_v20 = vpack.c.bf16 %v1633_v4, %v1625_v53  ;;  %v1446_v53 = vld [vmem:[#allocation19 + $0x170] sm:$0xff]  ;;  %v1453_v4 = vld [vmem:[#allocation19 + $0x1a8] sm:$0xff] }
 0x360   :  { %2509 = vmatpush1.bf16.msra.mxu0 %v2508_v41  ;;  %v1632_v41 = vld [vmem:[#allocation19 + $0x740] sm:$0xff] }
 0x361   :  { %2511 = vmatprep.subr.bf16.mxu0 %v2510_v58  ;;  %v2548_v58 = vpack.c.bf16 %v1632_v41, %v1624_v24  ;;  %v1463_v24 = vld [vmem:[#allocation19 + $0x1f8] sm:$0xff] }
 0x364   :  { %2513 = vmatpush1.bf16.msra.mxu0 %v2512_v32  ;;  %v1651_v32 = vld [vmem:[#allocation19 + $0x7d8] sm:$0xff] }
 0x365   :  { %2515 = vmatprep.subr.bf16.mxu0 %v2514_v33  ;;  %v1640_v33 = vld [vmem:[#allocation19 + $0x780] sm:$0xff]  ;;  %v2614_v36 = vpack.c.bf16 %v1651_v32, %v1643_v30  ;;  %v1454_v32 = vld [vmem:[#allocation19 + $0x1b0] sm:$0xff] }
 0x366   :  { %v2552_v40 = vpack.c.bf16 %v1648_v35, %v1640_v33  ;;  %v1462_v33 = vld [vmem:[#allocation19 + $0x1f0] sm:$0xff]  ;;  %v1469_v35 = vld [vmem:[#allocation19 + $0x228] sm:$0xff] }
 0x367   :  { %2615 = vmatprep.subr.bf16.mxu1 %v2614_v36  ;;  %v1477_v36 = vld [vmem:[#allocation19 + $0x268] sm:$0xff] }
 0x368   :  { %2517 = vmatpush1.bf16.msra.mxu0 %v2516_v44  ;;  %v1650_v44 = vld [vmem:[#allocation19 + $0x7d0] sm:$0xff] }
 0x369   :  { %2519 = vmatprep.subr.bf16.mxu0 %v2518_v45  ;;  %v2616_v45 = vpack.c.bf16 %v1650_v44, %v1642_v43  ;;  %v1479_v43 = vld [vmem:[#allocation19 + $0x278] sm:$0xff]  ;;  %v2632_v44 = vpack.c.bf16 %v1460_v15, %v1452_v13  ;;  %v1533_v13 = vld [vmem:[#allocation19 + $0x428] sm:$0xff] }
 0x36a   :  { %v1541_v15 = vld [vmem:[#allocation19 + $0x468] sm:$0xff] }
 0x36b   :  { %2617 = vmatpush1.bf16.msra.mxu1 %v2616_v45  ;;  %v2696_v45 = vpack.c.bf16 %v1462_v33, %v1454_v32 }
 0x36c   :  { %2521 = vmatpush1.bf16.msra.mxu0 %v2520_v52  ;;  %v1415_v52 = vld [vmem:[#allocation19 + $0x78] sm:$0xff] }
 0x36d   :  { %2523 = vmatprep.subr.bf16.mxu0 %v2522_v54  ;;  %v2682_v54 = vpack.c.bf16 %v1415_v52, %v1407_v49  ;;  %v2634_v49 = vpack.c.bf16 %v1477_v36, %v1469_v35  ;;  %v1470_v52 = vld [vmem:[#allocation19 + $0x230] sm:$0xff]  ;;  %v1532_v35 = vld [vmem:[#allocation19 + $0x420] sm:$0xff] }
 0x36e   :  { %v1540_v36 = vld [vmem:[#allocation19 + $0x460] sm:$0xff] }
 0x36f   :  { %2683 = vmatprep.subr.bf16.mxu1 %v2682_v54  ;;  %v1478_v54 = vld [vmem:[#allocation19 + $0x270] sm:$0xff] }
 0x370   :  { %2525 = vmatpush1.bf16.msra.mxu0 %v2524_v63 }
 0x371   :  { %2527 = vmatprep.subr.bf16.mxu0 %v2526_v2  ;;  %v1406_v2 = vld [vmem:[#allocation19 + $0x30] sm:$0xff] }
 0x372   :  { %v2684_v19 = vpack.c.bf16 %v1414_v5, %v1406_v2  ;;  %v1495_v2 = vld [vmem:[#allocation19 + $0x2f8] sm:$0xff]  ;;  %v2636_v5 = vpack.c.bf16 %v1476_v48, %v1468_v46  ;;  %v1549_v46 = vld [vmem:[#allocation19 + $0x4a8] sm:$0xff] }
 0x373   :  { %v1557_v48 = vld [vmem:[#allocation19 + $0x4e8] sm:$0xff] }
 0x374   :  { %2529 = vmatpush1.bf16.msra.mxu0 %v2528_v14  ;;  %v1431_v14 = vld [vmem:[#allocation19 + $0xf8] sm:$0xff] }
 0x375   :  { %2531 = vmatprep.subr.bf16.mxu0 %v2530_v17  ;;  %v2686_v11 = vpack.c.bf16 %v1431_v14, %v1423_v12  ;;  %v1492_v12 = vld [vmem:[#allocation19 + $0x2e0] sm:$0xff]  ;;  %v2638_v14 = vpack.c.bf16 %v1493_v61, %v1485_v56 }
 0x376   :  { %v1548_v56 = vld [vmem:[#allocation19 + $0x4a0] sm:$0xff] }
 0x377   :  { %v1556_v61 = vld [vmem:[#allocation19 + $0x4e0] sm:$0xff] }
 0x378   :  { %2533 = vmatpush1.bf16.msra.mxu0 %v2532_v27 }
 0x379   :  { %2535 = vmatprep.subr.bf16.mxu0 %v2534_v28  ;;  %v2622_v28 = vpack.c.bf16 %v1429_v9, %v1421_v7  ;;  %v2700_v7 = vpack.c.bf16 %v1478_v54, %v1470_v52  ;;  %v1484_v9 = vld [vmem:[#allocation19 + $0x2a0] sm:$0xff]  ;;  %v2652_v52 = vpack.c.bf16 %v1540_v36, %v1532_v35  ;;  %v1613_v35 = vld [vmem:[#allocation19 + $0x6a8] sm:$0xff] }
 0x37a   :  { %v2640_v21 = vpack.c.bf16 %v1492_v12, %v1484_v9  ;;  %v1565_v9 = vld [vmem:[#allocation19 + $0x528] sm:$0xff] }
 0x37b   :  { %v1573_v12 = vld [vmem:[#allocation19 + $0x568] sm:$0xff] }
 0x37c   :  { %2537 = vmatpush1.bf16.msra.mxu0 %v2536_v34  ;;  %v1445_v34 = vld [vmem:[#allocation19 + $0x168] sm:$0xff] }
 0x37d   :  { %2539 = vmatprep.subr.bf16.mxu0 %v2538_v42  ;;  %v1439_v42 = vld [vmem:[#allocation19 + $0x138] sm:$0xff]  ;;  %v1621_v36 = vld [vmem:[#allocation19 + $0x6e8] sm:$0xff] }
 0x37e   :  { %v2690_v39 = vpack.c.bf16 %v1447_v59, %v1439_v42 }
 0x380   :  { %2541 = vmatpush1.bf16.msra.mxu0 %v2540_v25  ;;  %v1444_v25 = vld [vmem:[#allocation19 + $0x160] sm:$0xff] }
 0x381   :  { %2543 = vmatprep.subr.bf16.mxu0 %v2542_v37  ;;  %v2626_v37 = vpack.c.bf16 %v1445_v34, %v1437_v1  ;;  %v2628_v41 = vpack.c.bf16 %v1444_v25, %v1436_v23  ;;  %v1500_v1 = vld [vmem:[#allocation19 + $0x320] sm:$0xff]  ;;  %v1517_v23 = vld [vmem:[#allocation19 + $0x3a8] sm:$0xff] }
 0x382   :  { %v1508_v34 = vld [vmem:[#allocation19 + $0x360] sm:$0xff]  ;;  %v1525_v25 = vld [vmem:[#allocation19 + $0x3e8] sm:$0xff] }
 0x384   :  { %2545 = vmatpush1.bf16.msra.mxu0 %v2544_v6  ;;  %v1461_v6 = vld [vmem:[#allocation19 + $0x1e8] sm:$0xff] }
 0x385   :  { %2547 = vmatprep.subr.bf16.mxu0 %v2546_v20  ;;  %v1455_v20 = vld [vmem:[#allocation19 + $0x1b8] sm:$0xff]  ;;  %v2630_v30 = vpack.c.bf16 %v1461_v6, %v1453_v4  ;;  %v1516_v4 = vld [vmem:[#allocation19 + $0x3a0] sm:$0xff] }
 0x386   :  { %v1524_v6 = vld [vmem:[#allocation19 + $0x3e0] sm:$0xff] }
 0x387   :  { %v2648_v32 = vpack.c.bf16 %v1524_v6, %v1516_v4  ;;  %v1597_v4 = vld [vmem:[#allocation19 + $0x628] sm:$0xff] }
 0x388   :  { %2549 = vmatpush1.bf16.msra.mxu0 %v2548_v58  ;;  %v2692_v58 = vpack.c.bf16 %v1446_v53, %v1438_v51  ;;  %v2644_v51 = vpack.c.bf16 %v1508_v34, %v1500_v1  ;;  %v1581_v1 = vld [vmem:[#allocation19 + $0x5a8] sm:$0xff] }
 0x389   :  { %2551 = vmatprep.subr.bf16.mxu0 %v2550_v31  ;;  %v2694_v31 = vpack.c.bf16 %v1463_v24, %v1455_v20  ;;  %v2646_v20 = vpack.c.bf16 %v1525_v25, %v1517_v23  ;;  %v1589_v34 = vld [vmem:[#allocation19 + $0x5e8] sm:$0xff]  ;;  %v1580_v23 = vld [vmem:[#allocation19 + $0x5a0] sm:$0xff] }
 0x38a   :  { %v1588_v25 = vld [vmem:[#allocation19 + $0x5e0] sm:$0xff]  ;;  %v1605_v6 = vld [vmem:[#allocation19 + $0x668] sm:$0xff] }
 0x38c   :  { %2553 = vmatpush1.bf16.msra.mxu0 %v2552_v40  ;;  %v1471_v40 = vld [vmem:[#allocation19 + $0x238] sm:$0xff] }
 0x38d   :  { %2619 = vmatprep.subr.bf16.mxu0 %v2618_v50  ;;  %v2698_v50 = vpack.c.bf16 %v1479_v43, %v1471_v40  ;;  %v2650_v40 = vpack.c.bf16 %v1541_v15, %v1533_v13  ;;  %v1596_v13 = vld [vmem:[#allocation19 + $0x620] sm:$0xff] }
 0x38e   :  { %v1604_v15 = vld [vmem:[#allocation19 + $0x660] sm:$0xff] }
 0x41e   :  { %v3455_v60 = vpop.f32.mrb[10].mxu0 }
 0x41f   :  { %v3457_v63 = vpop.f32.mrb[11].mxu0 }
 0x422   :  { %v3459_v17 = vpop.f32.mrb[12].mxu0 }
 0x423   :  { %v1397_v27 = vpop.f32.mrb[13].mxu0 }
 0x424   :  { %1720 = vmatprep.mubr.f32.mxu0 %v1397_v27  ;;  %1791 = vmatprep.mubr.f32.mxu1 %v1397_v27 }
 0x425   :  { %1721 = vmatmul.mubr.f32.vlgmr.msra.gmra.mrb[14].mxu0 %v3459_v17  ;;  %1792 = vmatmul.mubr.f32.vlgmr.msra.gmra.mrb[4].mxu1 %v3459_v17 }
 0x426   :  { %2621 = vmatpush1.bf16.msra.mxu0 %v2620_v18  ;;  %2685 = vmatpush1.bf16.msra.mxu1 %v2684_v19  ;;  %v2702_v18 = vpack.c.bf16 %v1495_v2, %v1487_v62  ;;  %v1486_v19 = vld [vmem:[#allocation19 + $0x2b0] sm:$0xff]  ;;  %v2654_v62 = vpack.c.bf16 %v1557_v48, %v1549_v46  ;;  %v1612_v46 = vld [vmem:[#allocation19 + $0x6a0] sm:$0xff] }
 0x427   :  { %2623 = vmatprep.subr.bf16.mxu0 %v2622_v28  ;;  %2687 = vmatprep.subr.bf16.mxu1 %v2686_v11  ;;  %v1503_v28 = vld [vmem:[#allocation19 + $0x338] sm:$0xff]  ;;  %v2704_v0 = vpack.c.bf16 %v1494_v22, %v1486_v19  ;;  %v2656_v19 = vpack.c.bf16 %v1556_v61, %v1548_v56  ;;  %v1620_v48 = vld [vmem:[#allocation19 + $0x6e0] sm:$0xff]  ;;  %v1629_v56 = vld [vmem:[#allocation19 + $0x728] sm:$0xff] }
 0x428   :  { %1862 = vmatprep.mubr.f32.mxu0 %v1397_v27  ;;  %1933 = vmatprep.mubr.f32.mxu1 %v1397_v27  ;;  %v1509_v27 = vld [vmem:[#allocation19 + $0x368] sm:$0xff]  ;;  %v1511_v11 = vld [vmem:[#allocation19 + $0x378] sm:$0xff] }
 0x429   :  { %v2642_v42 = vpack.c.bf16 %v1509_v27, %v1501_v26  ;;  %v2706_v59 = vpack.c.bf16 %v1511_v11, %v1503_v28  ;;  %v1564_v26 = vld [vmem:[#allocation19 + $0x520] sm:$0xff]  ;;  %v2658_v28 = vpack.c.bf16 %v1573_v12, %v1565_v9  ;;  %v1637_v61 = vld [vmem:[#allocation19 + $0x768] sm:$0xff] }
 0x42a   :  { %2625 = vmatpush1.bf16.msra.mxu0 %v2624_v8  ;;  %2689 = vmatpush1.bf16.msra.mxu1 %v2688_v10  ;;  %v1502_v8 = vld [vmem:[#allocation19 + $0x330] sm:$0xff]  ;;  %v1572_v27 = vld [vmem:[#allocation19 + $0x560] sm:$0xff] }
 0x42b   :  { %2627 = vmatprep.subr.bf16.mxu0 %v2626_v37  ;;  %2691 = vmatprep.subr.bf16.mxu1 %v2690_v39  ;;  %v1510_v10 = vld [vmem:[#allocation19 + $0x370] sm:$0xff]  ;;  %v1519_v37 = vld [vmem:[#allocation19 + $0x3b8] sm:$0xff]  ;;  %v1628_v9 = vld [vmem:[#allocation19 + $0x720] sm:$0xff] }
 0x42c   :  { %v1527_v39 = vld [vmem:[#allocation19 + $0x3f8] sm:$0xff]  ;;  %v2708_v53 = vpack.c.bf16 %v1510_v10, %v1502_v8  ;;  %v2660_v8 = vpack.c.bf16 %v1572_v27, %v1564_v26  ;;  %v1636_v12 = vld [vmem:[#allocation19 + $0x760] sm:$0xff]  ;;  %v1645_v26 = vld [vmem:[#allocation19 + $0x7a8] sm:$0xff]  ;;  %v1289_v27 = vpop.permute.xlu0 %1288 }
 0x42d   :  { %v2710_v24 = vpack.c.bf16 %v1527_v39, %v1519_v37  ;;  %v2662_v37 = vpack.c.bf16 %v1589_v34, %v1581_v1  ;;  %v1308_v1 = vstv %s3463_s14  ;;  %v2676_v34 = vpack.c.bf16 %v1636_v12, %v1628_v9 }
 0x42e   :  { %2629 = vmatpush1.bf16.msra.mxu0 %v2628_v41  ;;  %2693 = vmatpush1.bf16.msra.mxu1 %v2692_v58  ;;  %v1518_v41 = vld [vmem:[#allocation19 + $0x3b0] sm:$0xff] }
 0x42f   :  { %2631 = vmatprep.subr.bf16.mxu0 %v2630_v30  ;;  %2695 = vmatprep.subr.bf16.mxu1 %v2694_v31  ;;  %v1526_v58 = vld [vmem:[#allocation19 + $0x3f0] sm:$0xff]  ;;  %v1535_v30 = vld [vmem:[#allocation19 + $0x438] sm:$0xff] }
 0x430   :  { %v1543_v31 = vld [vmem:[#allocation19 + $0x478] sm:$0xff]  ;;  %v2712_v33 = vpack.c.bf16 %v1526_v58, %v1518_v41  ;;  %v2664_v41 = vpack.c.bf16 %v1588_v25, %v1580_v23  ;;  %v1652_v23 = vld [vmem:[#allocation19 + $0x7e0] sm:$0xff]  ;;  %v1646_v25 = vld [vmem:[#allocation19 + $0x7b0] sm:$0xff] }
 0x431   :  { %v2714_v43 = vpack.c.bf16 %v1543_v31, %v1535_v30  ;;  %v2666_v30 = vpack.c.bf16 %v1605_v6, %v1597_v4 }
 0x432   :  { %2633 = vmatpush1.bf16.msra.mxu0 %v2632_v44  ;;  %2697 = vmatpush1.bf16.msra.mxu1 %v2696_v45  ;;  %v1534_v44 = vld [vmem:[#allocation19 + $0x430] sm:$0xff] }
 0x433   :  { %2635 = vmatprep.subr.bf16.mxu0 %v2634_v49  ;;  %2699 = vmatprep.subr.bf16.mxu1 %v2698_v50  ;;  %v1542_v45 = vld [vmem:[#allocation19 + $0x470] sm:$0xff]  ;;  %v1551_v49 = vld [vmem:[#allocation19 + $0x4b8] sm:$0xff] }
 0x434   :  { %v1559_v50 = vld [vmem:[#allocation19 + $0x4f8] sm:$0xff]  ;;  %v2716_v54 = vpack.c.bf16 %v1542_v45, %v1534_v44  ;;  %v2668_v44 = vpack.c.bf16 %v1604_v15, %v1596_v13 }
 0x435   :  { %v2718_v2 = vpack.c.bf16 %v1559_v50, %v1551_v49  ;;  %v2670_v49 = vpack.c.bf16 %v1621_v36, %v1613_v35 }
 0x436   :  { %2637 = vmatpush1.bf16.msra.mxu0 %v2636_v5  ;;  %2701 = vmatpush1.bf16.msra.mxu1 %v2700_v7  ;;  %v1550_v5 = vld [vmem:[#allocation19 + $0x4b0] sm:$0xff] }
 0x437   :  { %2639 = vmatprep.subr.bf16.mxu0 %v2638_v14  ;;  %2703 = vmatprep.subr.bf16.mxu1 %v2702_v18  ;;  %v1558_v7 = vld [vmem:[#allocation19 + $0x4f0] sm:$0xff]  ;;  %v1567_v14 = vld [vmem:[#allocation19 + $0x538] sm:$0xff] }
 0x438   :  { %v1575_v18 = vld [vmem:[#allocation19 + $0x578] sm:$0xff]  ;;  %v2720_v22 = vpack.c.bf16 %v1558_v7, %v1550_v5  ;;  %v2672_v5 = vpack.c.bf16 %v1620_v48, %v1612_v46  ;;  %v2231_v46 = vpop.permute.xlu1 %2230 }
 0x439   :  { %v2722_v11 = vpack.c.bf16 %v1575_v18, %v1567_v14  ;;  %v2674_v14 = vpack.c.bf16 %v1637_v61, %v1629_v56 }
 0x43a   :  { %2641 = vmatpush1.bf16.msra.mxu0 %v2640_v21  ;;  %2705 = vmatpush1.bf16.msra.mxu1 %v2704_v0  ;;  %v1566_v21 = vld [vmem:[#allocation19 + $0x530] sm:$0xff] }
 0x43b   :  { %2643 = vmatprep.subr.bf16.mxu0 %v2642_v42  ;;  %2707 = vmatprep.subr.bf16.mxu1 %v2706_v59  ;;  %v1574_v0 = vld [vmem:[#allocation19 + $0x570] sm:$0xff]  ;;  %v1583_v42 = vld [vmem:[#allocation19 + $0x5b8] sm:$0xff] }
 0x43c   :  { %v1591_v59 = vld [vmem:[#allocation19 + $0x5f8] sm:$0xff]  ;;  %v2724_v10 = vpack.c.bf16 %v1574_v0, %v1566_v21  ;;  %v1292_v0 = vadd.f32 %v1289_v27, %v3424_v57 }
 0x43d   :  { %v2726_v39 = vpack.c.bf16 %v1591_v59, %v1583_v42  ;;  %v1655_v21 = vld [vmem:[#allocation19 + $0x7f8] sm:$0xff]  ;;  %v1644_v59 = vld [vmem:[#allocation19 + $0x7a0] sm:$0xff] }
 0x43e   :  { %2645 = vmatpush1.bf16.msra.mxu0 %v2644_v51  ;;  %2709 = vmatpush1.bf16.msra.mxu1 %v2708_v53  ;;  %v1582_v51 = vld [vmem:[#allocation19 + $0x5b0] sm:$0xff]  ;;  %v2680_v57 = vpack.c.bf16 %v1652_v23, %v1644_v59  ;;  %vm1301_vm3 = vcmp.ge.f32.partialorder %v1292_v0, 0.0 }
 0x43f   :  { %2647 = vmatprep.subr.bf16.mxu0 %v2646_v20  ;;  %2711 = vmatprep.subr.bf16.mxu1 %v2710_v24  ;;  %v1590_v53 = vld [vmem:[#allocation19 + $0x5f0] sm:$0xff]  ;;  %v1599_v20 = vld [vmem:[#allocation19 + $0x638] sm:$0xff] }
 0x440   :  { %v1607_v24 = vld [vmem:[#allocation19 + $0x678] sm:$0xff]  ;;  %v2728_v58 = vpack.c.bf16 %v1590_v53, %v1582_v51  ;;  %v1310_v51 = vmul.f32 %v1308_v1, %v1292_v0  ;;  %v1294_v53 = vadd.f32 %v1289_v27, %v3449_v29 }
 0x441   :  { %v2730_v31 = vpack.c.bf16 %v1607_v24, %v1599_v20  ;;  %v1293_v20 = vadd.f32 %v1289_v27, %v3447_v16  ;;  %v1298_v16 = vadd.f32 %v1289_v27, %v3457_v63 }
 0x442   :  { %2649 = vmatpush1.bf16.msra.mxu0 %v2648_v32  ;;  %2713 = vmatpush1.bf16.msra.mxu1 %v2712_v33  ;;  %v1598_v32 = vld [vmem:[#allocation19 + $0x630] sm:$0xff]  ;;  %v1312_v24 = vmul.f32 %v1308_v1, %v1294_v53  ;;  %vm1303_vm5 = vcmp.ge.f32.partialorder %v1294_v53, 0.0 }
 0x443   :  { %2651 = vmatprep.subr.bf16.mxu0 %v2650_v40  ;;  %2715 = vmatprep.subr.bf16.mxu1 %v2714_v43  ;;  %v1606_v33 = vld [vmem:[#allocation19 + $0x670] sm:$0xff]  ;;  %v1615_v40 = vld [vmem:[#allocation19 + $0x6b8] sm:$0xff]  ;;  %v1311_v29 = vmul.f32 %v1308_v1, %v1293_v20  ;;  %vm1302_vm6 = vcmp.ge.f32.partialorder %v1293_v20, 0.0  ;;  %vm1307_vm9 = vcmp.ge.f32.partialorder %v1298_v16, 0.0 }
 0x444   :  { %v1623_v43 = vld [vmem:[#allocation19 + $0x6f8] sm:$0xff]  ;;  %v2732_v45 = vpack.c.bf16 %v1606_v33, %v1598_v32  ;;  %v1297_v32 = vadd.f32 %v1289_v27, %v3455_v60 }
 0x445   :  { %v2734_v50 = vpack.c.bf16 %v1623_v43, %v1615_v40 }
 0x446   :  { %2653 = vmatpush1.bf16.msra.mxu0 %v2652_v52  ;;  %2717 = vmatpush1.bf16.msra.mxu1 %v2716_v54  ;;  %v1614_v52 = vld [vmem:[#allocation19 + $0x6b0] sm:$0xff]  ;;  %v1315_v63 = vmul.f32 %v1308_v1, %v1297_v32  ;;  %vm1306_vm10 = vcmp.ge.f32.partialorder %v1297_v32, 0.0 }
 0x447   :  { %2655 = vmatprep.subr.bf16.mxu0 %v2654_v62  ;;  %2719 = vmatprep.subr.bf16.mxu1 %v2718_v2  ;;  %v1622_v54 = vld [vmem:[#allocation19 + $0x6f0] sm:$0xff]  ;;  %v1631_v62 = vld [vmem:[#allocation19 + $0x738] sm:$0xff] }
 0x448   :  { %v1639_v2 = vld [vmem:[#allocation19 + $0x778] sm:$0xff]  ;;  %v2736_v7 = vpack.c.bf16 %v1622_v54, %v1614_v52  ;;  %v1323_v60 = vsel %vm1306_vm10, %v1297_v32, %v1315_v63 }
 0x449   :  { %v2738_v18 = vpack.c.bf16 %v1639_v2, %v1631_v62 }
 0x44a   :  { %2657 = vmatpush1.bf16.msra.mxu0 %v2656_v19  ;;  %2721 = vmatpush1.bf16.msra.mxu1 %v2720_v22  ;;  %v1630_v19 = vld [vmem:[#allocation19 + $0x730] sm:$0xff] }
 0x44b   :  { %2659 = vmatprep.subr.bf16.mxu0 %v2658_v28  ;;  %2723 = vmatprep.subr.bf16.mxu1 %v2722_v11  ;;  %v1638_v22 = vld [vmem:[#allocation19 + $0x770] sm:$0xff]  ;;  %v1653_v28 = vld [vmem:[#allocation19 + $0x7e8] sm:$0xff]  ;;  %v1647_v11 = vld [vmem:[#allocation19 + $0x7b8] sm:$0xff] }
 0x44c   :  { %v2740_v42 = vpack.c.bf16 %v1638_v22, %v1630_v19 }
 0x44e   :  { %2661 = vmatpush1.bf16.msra.mxu0 %v2660_v8  ;;  %2725 = vmatpush1.bf16.msra.mxu1 %v2724_v10  ;;  %v2678_v8 = vpack.c.bf16 %v1653_v28, %v1645_v26  ;;  %v2742_v10 = vpack.c.bf16 %v1655_v21, %v1647_v11 }
 0x44f   :  { %2663 = vmatprep.subr.bf16.mxu0 %v2662_v37  ;;  %2727 = vmatprep.subr.bf16.mxu1 %v2726_v39  ;;  %v1654_v37 = vld [vmem:[#allocation19 + $0x7f0] sm:$0xff]  ;;  %v1291_v39 = vadd.f32 %v1289_v27, %v3420_v47  ;;  %v1318_v47 = vsel %vm1301_vm3, %v1292_v0, %v1310_v51 }
 0x450   :  { %v2744_v4 = vpack.c.bf16 %v1654_v37, %v1646_v25 }
 0x451   :  { %v1309_v6 = vmul.f32 %v1308_v1, %v1291_v39  ;;  %vm1300_vm4 = vcmp.ge.f32.partialorder %v1291_v39, 0.0 }
 0x452   :  { %2665 = vmatpush1.bf16.msra.mxu0 %v2664_v41  ;;  %2729 = vmatpush1.bf16.msra.mxu1 %v2728_v58  ;;  %v1296_v41 = vadd.f32 %v1289_v27, %v3453_v55  ;;  %v1295_v58 = vadd.f32 %v1289_v27, %v3451_v38  ;;  %v1299_v55 = vld [vmem:[#allocation13] sm:$0xf]  ;;  %v1319_v38 = vsel %vm1302_vm6, %v1293_v20, %v1311_v29 }
 0x453   :  { %2667 = vmatprep.subr.bf16.mxu0 %v2666_v30  ;;  %2731 = vmatprep.subr.bf16.mxu1 %v2730_v31  ;;  %v1317_v13 = vsel %vm1300_vm4, %v1291_v39, %v1309_v6  ;;  %v1320_v30 = vsel %vm1303_vm5, %v1294_v53, %v1312_v24 }
 0x454   :  { %v1314_v15 = vmul.f32 %v1308_v1, %v1296_v41  ;;  %vm1305_vm7 = vcmp.ge.f32.partialorder %v1296_v41, 0.0  ;;  %v1313_v31 = vmul.f32 %v1308_v1, %v1295_v58  ;;  %vm1304_vm8 = vcmp.ge.f32.partialorder %v1295_v58, 0.0 }
 0x456   :  { %2669 = vmatpush1.bf16.msra.mxu0 %v2668_v44  ;;  %2733 = vmatpush1.bf16.msra.mxu1 %v2732_v45  ;;  %v1322_v33 = vsel %vm1305_vm7, %v1296_v41, %v1314_v15  ;;  %v1321_v35 = vsel %vm1304_vm8, %v1295_v58, %v1313_v31 }
 0x457   :  { %2671 = vmatprep.subr.bf16.mxu0 %v2670_v49  ;;  %2735 = vmatprep.subr.bf16.mxu1 %v2734_v50 }
 0x45a   :  { %2673 = vmatpush1.bf16.msra.mxu0 %v2672_v5  ;;  %2737 = vmatpush1.bf16.msra.mxu1 %v2736_v7 }
 0x45b   :  { %2675 = vmatprep.subr.bf16.mxu0 %v2674_v14  ;;  %2739 = vmatprep.subr.bf16.mxu1 %v2738_v18 }
 0x45e   :  { %2677 = vmatpush1.bf16.msra.mxu0 %v2676_v34  ;;  %2741 = vmatpush1.bf16.msra.mxu1 %v2740_v42 }
 0x45f   :  { %2679 = vmatprep.subr.bf16.mxu0 %v2678_v8  ;;  %2743 = vmatprep.subr.bf16.mxu1 %v2742_v10 }
 0x462   :  { %2681 = vmatpush1.bf16.msra.mxu0 %v2680_v57  ;;  %2745 = vmatpush1.bf16.msra.mxu1 %v2744_v4 }
 0x463   :  { %1943 = vmatprep.subr.mxu0 %v1318_v47 }
 0x465   :  { %1863 = vmatmul.mubr.f32.vlgmr.msra.gmra.mrb[16].mxu0 %v3459_v17  ;;  %1934 = vmatmul.mubr.f32.vlgmr.msra.gmra.mrb[6].mxu1 %v3459_v17  ;;  %v1316_v17 = vmul.f32 %v1308_v1, %v1298_v16 }
 0x466   :  { %1944 = vmatpush1.msra.mxu0 %v1317_v13  ;;  %2007 = vmatprep.mubr.f32.mxu0 %v3071_v3 }
 0x467   :  { %2014 = vmatprep.subr.mxu0 %v1320_v30  ;;  %v1324_v36 = vsel %vm1307_vm9, %v1298_v16, %v1316_v17 }
 0x469   :  { %2294 = vmatmul.mubr.msk.f32.vlgmr.msra.gmra.mrb[14].mxu0 %vm183_vm0, %v1299_v55 }
 0x46a   :  { %2015 = vmatpush1.msra.mxu0 %v1319_v38  ;;  %2078 = vmatprep.mubr.f32.mxu0 %v3071_v3 }
 0x46b   :  { %2085 = vmatprep.subr.mxu0 %v1322_v33 }
 0x46d   :  { %2295 = vmatmul.mubr.msk.f32.vlgmr.msra.gmra.mrb[18].mxu0 %vm183_vm0, %v1299_v55 }
 0x46e   :  { %2086 = vmatpush1.msra.mxu0 %v1321_v35  ;;  %2149 = vmatprep.mubr.f32.mxu0 %v3071_v3 }
 0x46f   :  { %2156 = vmatprep.subr.mxu0 %v1324_v36 }
 0x471   :  { %2296 = vmatmul.mubr.msk.f32.vlgmr.msra.gmra.mrb[16].mxu0 %vm183_vm0, %v1299_v55 }
 0x472   :  { %2157 = vmatpush1.msra.mxu0 %v1323_v60  ;;  %2220 = vmatprep.mubr.f32.mxu0 %v3071_v3 }
 0x475   :  { %2297 = vmatmul.mubr.msk.f32.vlgmr.msra.gmra.mrb[20].mxu0 %vm183_vm0, %v1299_v55 }
 0x4f8   :  { %v1793_v40 = vpop.f32.mrb[4].mxu1 }
 0x4f9   :  { %v1795_v43 = vpop.f32.mrb[5].mxu1 }
 0x538   :  { %v1935_v44 = vpop.f32.mrb[6].mxu1 }
 0x539   :  { %v1937_v45 = vpop.f32.mrb[7].mxu1 }
 0x53c   :  { %v2009_v48 = vpop.f32.mrb[14].mxu0 }
 0x53d   :  { %v2233_v49 = vadd.f32 %v2231_v46, %v2009_v48  ;;  %v2011_v50 = vpop.f32.mrb[15].mxu0 }
 0x53e   :  { %v2234_v52 = vadd.f32 %v2231_v46, %v2011_v50 }
 0x540   :  { %v2249_v54 = vcombine.low %v2233_v49, %v2234_v52  ;;  %v2080_v56 = vpop.f32.mrb[18].mxu0 }
 0x541   :  { %v2081_v61 = vadd.f32 %v2080_v56, %v1793_v40  ;;  %v2082_v62 = vpop.f32.mrb[19].mxu0 }
 0x542   :  { %2257 = vst [vmem:[#allocation21] sm:$0xff] %v2249_v54  ;;  %v2083_v2 = vadd.f32 %v2082_v62, %v1795_v43 }
 0x543   :  { %v2235_v5 = vadd.f32 %v2231_v46, %v2081_v61 }
 0x544   :  { %v2236_v7 = vadd.f32 %v2231_v46, %v2083_v2  ;;  %v2151_v3 = vpop.f32.mrb[16].mxu0 }
 0x545   :  { %v2237_v9 = vadd.f32 %v2231_v46, %v2151_v3  ;;  %v2153_v12 = vpop.f32.mrb[17].mxu0 }
 0x546   :  { %v2250_v14 = vcombine.low %v2235_v5, %v2236_v7  ;;  %v2238_v18 = vadd.f32 %v2231_v46, %v2153_v12 }
 0x548   :  { %2258 = vst [vmem:[#allocation21 + $0x8] sm:$0xff] %v2250_v14  ;;  %v2251_v19 = vcombine.low %v2237_v9, %v2238_v18  ;;  %v2222_v22 = vpop.f32.mrb[20].mxu0 }
 0x549   :  { %v2223_v26 = vadd.f32 %v2222_v22, %v1935_v44  ;;  %v2224_v27 = vpop.f32.mrb[21].mxu0 }
 0x54a   :  { %2259 = vst [vmem:[#allocation21 + $0x10] sm:$0xff] %v2251_v19  ;;  %v2225_v28 = vadd.f32 %v2224_v27, %v1937_v45 }
 0x54b   :  { %v2239_v11 = vadd.f32 %v2231_v46, %v2223_v26 }
 0x54c   :  { %v2240_v21 = vadd.f32 %v2231_v46, %v2225_v28 }
 0x54e   :  { %v2252_v0 = vcombine.low %v2239_v11, %v2240_v21 }
 0x550   :  { %2260 = vst [vmem:[#allocation21 + $0x18] sm:$0xff] %v2252_v0 }
 0x551   :  { %3027 = shalt.err (!%p3024_p3)
}
 0x552   :  { %s3028_s27 = scalar_lea.hbm %s3507_s11, 512 }
 0x553   :  { %p3029_p4 = scmp.ne.s32.totalorder %s3507_s11, %s3028_s27  ;;  %p3032_p5 = scmp.lt.u32.totalorder %s3028_s27, %s3507_s11 }
 0x555   :  { %p3034_p6 = pnand %p3032_p5, %p3029_p4 }
 0x557   :  { %3037 = shalt.err (!%p3034_p6)
}
 0x558   :  { %2270 = dma.vmem_to_hbm [thread:$0]  %s2268_s1, 512, %s3507_s11, [#allocation4]  }
 0x559   :  { %3052 = dma.done.wait [#allocation4], 512  }
 0x55a   :  { %3053 = vsyncadd [#allocation4], 4294966784 }
 0x55b   :  { %2274 = vsyncpa [#allocation3], 1 }
 0x55c   :  { %2275 = vsyncpa [#allocation8], 1 }
 0x55d   :  { %2276 = vsyncpa [#allocation11], 1 }
 0x55e   :  { %2277 = vsyncpa [#allocation14], 1 }
 0x55f   :  { %2278 = vsyncpa [#allocation17], 1 }
 0x560   :  { %2279 = vsyncpa [#allocation20], 1 }
 0x561   :  { %2280 = vsyncpa [#allocation4], 1 }
 0x562   :  { %2281 = vsyncpa [#allocation5], 1 }

</bundles_post_ra>
